<compile_context>
chip_gen: v5e
topology: v5e:2x2
jax: 0.10.0
libtpu: 0.0.40
codegen_flags: <defaults>
</compile_context>

<pallas_src>
import jax
import jax.numpy as jnp
from jax.experimental import pallas as pl
from jax.experimental.pallas import tpu as pltpu


# ---------------------------------------------------------------------------
# helpers
# ---------------------------------------------------------------------------
def _round_up(x, m):
    return (x + m - 1) // m * m


def _pad_channels(c):
    """Lane-align large channel counts; only sublane-align (x8) small ones."""
    return _round_up(c, 128) if c >= 128 else _round_up(c, 8)


# ---------------------------------------------------------------------------
# Fused residual-block kernel
# ---------------------------------------------------------------------------
def _make_block_kernel(*, stride, hout, wout, cinp, coutp, has_sc):
    """conv1+BN1+ReLU -> conv2+BN2 -> (+ shortcut conv+BN | + identity)."""
    m = hout * wout

    def x_tap(x_ref, kh, kw):
        # Window of the (spatially padded) input feeding output pixel (r, c)
        # for tap (kh, kw): x_pad[stride*r + kh, stride*c + kw, :].
        if stride == 1:
            win = x_ref[kh:kh + hout, kw:kw + wout, :]
        else:  # polyphase layout: plane p*2+q holds x_pad[p::2, q::2]
            plane = (kh % 2) * 2 + (kw % 2)
            win = x_ref[plane, kh // 2:kh // 2 + hout, kw // 2:kw // 2 + wout, :]
        return win.reshape(m, cinp)

    def kernel(*refs):
        if has_sc:
            (x_ref, w1_ref, s1_ref, b1_ref, w2_ref, s2_ref, b2_ref,
             wsc_ref, ssc_ref, bsc_ref, o_ref, y1_ref) = refs
        else:
            (x_ref, w1_ref, s1_ref, b1_ref, w2_ref, s2_ref, b2_ref,
             o_ref, y1_ref) = refs

        # ---- conv1 (3x3, stride=s, pad=1) + BN1 + ReLU: 9 shifted dots ----
        acc = jnp.zeros((m, coutp), jnp.float32)
        for k in range(9):
            acc += jnp.dot(x_tap(x_ref, k // 3, k % 3), w1_ref[k],
                           preferred_element_type=jnp.float32)
        y1 = jnp.maximum(acc * s1_ref[...] + b1_ref[...], 0.0)

        # y1 never leaves VMEM: scratch with a zero halo (conv2's pad=1).
        y1_ref[...] = jnp.zeros_like(y1_ref)
        y1_ref[1:hout + 1, 1:wout + 1, :] = y1.reshape(hout, wout, coutp)

        # ---- conv2 (3x3, stride=1, pad=1) + BN2 ---------------------------
        acc = jnp.zeros((m, coutp), jnp.float32)
        for k in range(9):
            kh, kw = k // 3, k % 3
            tap = y1_ref[kh:kh + hout, kw:kw + wout, :].reshape(m, coutp)
            acc += jnp.dot(tap.astype(jnp.bfloat16), w2_ref[k],
                           preferred_element_type=jnp.float32)
        out = acc * s2_ref[...] + b2_ref[...]

        # ---- residual path (fused; no HBM round trip, no extra kernel) ----
        if has_sc:
            if stride == 1:
                xs = x_ref[1:1 + hout, 1:1 + wout, :]
            else:
                xs = x_ref[3, 0:hout, 0:wout, :]   # plane (1,1) == x[::2, ::2]
            res = jnp.dot(xs.reshape(m, cinp), wsc_ref[...],
                          preferred_element_type=jnp.float32)
            res = res * ssc_ref[...] + bsc_ref[...]
        else:
            # identity shortcut: cin == cout and stride == 1 (checked at prep)
            res = x_ref[1:1 + hout, 1:1 + wout, :].reshape(m, cinp)
            res = res.astype(jnp.float32)

        # no ReLU after the add (matches ResidualBlock.forward `x += residual`)
        o_ref[...] = (out + res).reshape(hout, wout, coutp).astype(o_ref.dtype)

    return kernel


def residual_block_forward(x_nhwc, bp, *, out_dtype):
    """One fused ResNetBasicBlock.  x_nhwc: (N, H, W, C<=cinp) any float dtype.
    Returns (N, Hout, Wout, coutp) in out_dtype (padded channels stay zero)."""
    stride, cinp, coutp = bp["stride"], bp["cinp"], bp["coutp"]
    has_sc = bp["wsc"] is not None
    batch, h, w, c = x_nhwc.shape
    hout = (h - 1) // stride + 1
    wout = (w - 1) // stride + 1

    # Spatial pad (conv padding=1) + channel pad, cast once to bf16 for the MXU.
    xp = jnp.pad(x_nhwc.astype(jnp.bfloat16),
                 ((0, 0), (1, 1), (1, 1), (0, cinp - c)))
    if stride == 1:
        xk = xp                                            # (N, H+2, W+2, cinp)
        x_spec = pl.BlockSpec((None,) + xk.shape[1:], lambda b: (b, 0, 0, 0))
    else:
        # polyphase / space-to-depth: plane p*2+q holds x_pad[p::2, q::2] so
        # every stride-2 tap inside the kernel is a unit-stride static slice.
        planes = [xp[:, p::2, q::2, :] for p in (0, 1) for q in (0, 1)]
        hh = max(a.shape[1] for a in planes)
        ww = max(a.shape[2] for a in planes)
        planes = [jnp.pad(a, ((0, 0), (0, hh - a.shape[1]),
                              (0, ww - a.shape[2]), (0, 0))) for a in planes]
        xk = jnp.stack(planes, axis=1)                     # (N, 4, hh, ww, cinp)
        x_spec = pl.BlockSpec((None,) + xk.shape[1:], lambda b: (b, 0, 0, 0, 0))

    def whole(arr):                    # full-array block, constant index map
        zeros = (0,) * arr.ndim

        def index_map(b):
            return zeros
        return pl.BlockSpec(arr.shape, index_map)

    args = [xk, bp["w1"], bp["s1"], bp["b1"], bp["w2"], bp["s2"], bp["b2"]]
    if has_sc:
        args += [bp["wsc"], bp["ssc"], bp["bsc"]]
    in_specs = [x_spec] + [whole(a) for a in args[1:]]

    kernel = _make_block_kernel(stride=stride, hout=hout, wout=wout,
                                cinp=cinp, coutp=coutp, has_sc=has_sc)

    m = hout * wout
    out_bytes = 4 if out_dtype == jnp.float32 else 2
    flops = 2 * batch * m * coutp * (9 * cinp + 9 * coutp
                                     + (cinp if has_sc else 0))
    bytes_accessed = (sum(int(a.size) * a.dtype.itemsize for a in args)
                      + batch * m * coutp * out_bytes)

    return pl.pallas_call(
        kernel,
        out_shape=jax.ShapeDtypeStruct((batch, hout, wout, coutp), out_dtype),
        grid_spec=pltpu.PrefetchScalarGridSpec(
            num_scalar_prefetch=0,
            grid=(batch,),      # >= 2 parallel steps at batch >= 2 (v7x megacore)
            in_specs=in_specs,
            out_specs=pl.BlockSpec((None, hout, wout, coutp),
                                   lambda b: (b, 0, 0, 0)),
            scratch_shapes=[
                pltpu.VMEM((hout + 2, wout + 2, coutp), jnp.float32)],
        ),
        compiler_params=pltpu.CompilerParams(
            dimension_semantics=("parallel",),
            vmem_limit_bytes=32 * 1024 * 1024),
        cost_estimate=pl.CostEstimate(flops=int(flops), transcendentals=0,
                                      bytes_accessed=int(bytes_accessed)),
    )(*args)


# ---------------------------------------------------------------------------
# Parameter preparation (hoisted out of the forward path, done once)
# ---------------------------------------------------------------------------
def prepare_block_params(p, eps=1e-5):
    cout, cin = p["w1"].shape[0], p["w1"].shape[1]
    stride = p["downsampling"]
    cinp, coutp = _pad_channels(cin), _pad_channels(cout)
    has_sc = p["shortcut"] is not None
    if not has_sc and not (stride == 1 and cinp == coutp):
        raise ValueError("identity shortcut requires stride == 1 and cin == cout")

    def pack3x3(w, ci, cip, co, cop):
        # PyTorch (Cout, Cin, 3, 3) -> (9, Cin_p, Cout_p) bf16, taps kh*3+kw
        w = jnp.transpose(w, (2, 3, 1, 0)).reshape(9, ci, co)
        w = jnp.pad(w, ((0, 0), (0, cip - ci), (0, cop - co)))
        return w.astype(jnp.bfloat16)

    def fold_bn(bn, cop):
        s = bn["gamma"] / jnp.sqrt(bn["var"] + eps)
        b = bn["beta"] - bn["mean"] * s
        pad = (0, cop - s.shape[0])
        return (jnp.pad(s, pad).reshape(1, cop).astype(jnp.float32),
                jnp.pad(b, pad).reshape(1, cop).astype(jnp.float32))

    s1, b1 = fold_bn(p["bn1"], coutp)
    s2, b2 = fold_bn(p["bn2"], coutp)
    prepped = dict(stride=stride, cin=cin, cout=cout, cinp=cinp, coutp=coutp,
                   w1=pack3x3(p["w1"], cin, cinp, cout, coutp), s1=s1, b1=b1,
                   w2=pack3x3(p["w2"], cout, coutp, cout, coutp), s2=s2, b2=b2,
                   wsc=None, ssc=None, bsc=None)
    if has_sc:
        wsc = p["shortcut"]["w"][:, :, 0, 0].T                     # (Cin, Cout)
        wsc = jnp.pad(wsc, ((0, cinp - cin), (0, coutp - cout)))
        prepped["wsc"] = wsc.astype(jnp.bfloat16)
        prepped["ssc"], prepped["bsc"] = fold_bn(p["shortcut"]["bn"], coutp)
    return prepped


def resnet_layer_forward(x_nchw, prepped_blocks):
    """ResNetLayer forward: (N, Cin, H, W) f32 -> (N, Cout, Hout, Wout) f32."""
    x = jnp.transpose(x_nchw, (0, 2, 3, 1))                 # NCHW -> NHWC
    for i, bp in enumerate(prepped_blocks):
        last = i == len(prepped_blocks) - 1
        x = residual_block_forward(
            x, bp, out_dtype=jnp.float32 if last else jnp.bfloat16)
    x = x[..., :prepped_blocks[-1]["cout"]]                  # drop channel pad once
    return jnp.transpose(x, (0, 3, 1, 2))                    # NHWC -> NCHW


# ---------------------------------------------------------------------------
# Pure-JAX reference (f32) for correctness checking
# ---------------------------------------------------------------------------
def _conv2d_ref(x_nhwc, w_oihw, stride, pad):
    return jax.lax.conv_general_dilated(
        x_nhwc, jnp.transpose(w_oihw, (2, 3, 1, 0)),
        window_strides=(stride, stride),
        padding=((pad, pad), (pad, pad)),
        dimension_numbers=("NHWC", "HWIO", "NHWC"))


def _bn_ref(x, bn, eps=1e-5):
    s = bn["gamma"] / jnp.sqrt(bn["var"] + eps)
    b = bn["beta"] - bn["mean"] * s
    return x * s + b


def resnet_layer_ref(x_nchw, blocks_params):
    x = jnp.transpose(x_nchw, (0, 2, 3, 1)).astype(jnp.float32)
    for p in blocks_params:
        stride = p["downsampling"]
        y = jax.nn.relu(_bn_ref(_conv2d_ref(x, p["w1"], stride, 1), p["bn1"]))
        y = _bn_ref(_conv2d_ref(y, p["w2"], 1, 1), p["bn2"])
        if p["shortcut"] is not None:
            res = _bn_ref(_conv2d_ref(x, p["shortcut"]["w"], stride, 0),
                          p["shortcut"]["bn"])
        else:
            res = x
        x = y + res
    return jnp.transpose(x, (0, 3, 1, 2))


# ---------------------------------------------------------------------------
# Deterministic parameter construction (eval-mode BatchNorm statistics)
# ---------------------------------------------------------------------------
def make_bn_params(key, c):
    k1, k2, k3, k4 = jax.random.split(key, 4)
    return {
        "gamma": jax.random.uniform(k1, (c,), jnp.float32, 0.5, 1.5),
        "beta": jax.random.normal(k2, (c,), jnp.float32) * 0.1,
        "mean": jax.random.normal(k3, (c,), jnp.float32) * 0.1,
        "var": jax.random.uniform(k4, (c,), jnp.float32, 0.5, 1.5),
    }


def make_basic_block_params(key, cin, cout, downsampling):
    ks = jax.random.split(key, 6)
    params = {
        "downsampling": downsampling,
        "w1": jax.random.normal(ks[0], (cout, cin, 3, 3), jnp.float32) * 0.1,
        "bn1": make_bn_params(ks[1], cout),
        "w2": jax.random.normal(ks[2], (cout, cout, 3, 3), jnp.float32) * 0.1,
        "bn2": make_bn_params(ks[3], cout),
        "shortcut": None,
    }
    if cin != cout:  # expansion = 1 -> expanded_channels == cout
        params["shortcut"] = {
            "w": jax.random.normal(ks[4], (cout, cin, 1, 1), jnp.float32) * 0.1,
            "bn": make_bn_params(ks[5], cout),
        }
    return params


def make_resnet_layer_params(key, cin, cout, n=1):
    downsampling = 2 if cin != cout else 1
    keys = jax.random.split(key, n)
    blocks = [make_basic_block_params(keys[0], cin, cout, downsampling)]
    for i in range(1, n):
        blocks.append(make_basic_block_params(keys[i], cout, cout, 1))
    return blocks


# ---------------------------------------------------------------------------
if __name__ == "__main__":
    key = jax.random.PRNGKey(0)
    k_x, k_p = jax.random.split(key)

    N, C_IN, C_OUT, H, W = 2, 4, 8, 16, 16
    x = jax.random.normal(k_x, (N, C_IN, H, W), jnp.float32)  # NCHW input

    raw_params = make_resnet_layer_params(k_p, C_IN, C_OUT, n=1)
    prepped = [prepare_block_params(p) for p in raw_params]   # packed once

    fwd = jax.jit(lambda xx: resnet_layer_forward(xx, prepped))
    out = jax.block_until_ready(fwd(x))

    expected_shape = (N, C_OUT, H // 2, W // 2)  # downsampling=2 (Cin != Cout)
    assert out.shape == expected_shape, (out.shape, expected_shape)
    assert out.dtype == jnp.float32

    # numerical check against a plain-JAX f32 reference (bf16 MXU operands ->
    # small tolerance)
    ref = jax.block_until_ready(resnet_layer_ref(x, raw_params))
    max_err = float(jnp.max(jnp.abs(out - ref)))
    assert jnp.allclose(out, ref, atol=5e-2, rtol=5e-2), max_err

    print("KERNEL_OK")
</pallas_src>

<mosaic_0001>
module attributes {stable_mosaic.version = 11 : i64} {
  func.func @kernel(%arg0: i32, %arg1: memref<1x4x9x9x8xbf16, #tpu.memory_space<vmem>>, %arg2: memref<9x8x8xbf16, #tpu.memory_space<vmem>>, %arg3: memref<1x8xf32, #tpu.memory_space<vmem>>, %arg4: memref<1x8xf32, #tpu.memory_space<vmem>>, %arg5: memref<9x8x8xbf16, #tpu.memory_space<vmem>>, %arg6: memref<1x8xf32, #tpu.memory_space<vmem>>, %arg7: memref<1x8xf32, #tpu.memory_space<vmem>>, %arg8: memref<8x8xbf16, #tpu.memory_space<vmem>>, %arg9: memref<1x8xf32, #tpu.memory_space<vmem>>, %arg10: memref<1x8xf32, #tpu.memory_space<vmem>>, %arg11: memref<1x8x8x8xf32, #tpu.memory_space<vmem>>, %arg12: memref<10x10x8xf32, #tpu.memory_space<vmem>>) attributes {dimension_semantics = [#tpu.dimension_semantics<parallel>], iteration_bounds = array<i64: 2>, scalar_prefetch = 0 : i64, scratch_operands = 1 : i64, tpu.core_type = #tpu.core_type<tc>, window_params = [{transform_indices = @transform_0, window_bounds = array<i64: 1, 4, 9, 9, 8>}, {pipeline_mode = #tpu.pipeline_mode<synchronous>, transform_indices = @transform_1, window_bounds = array<i64: 9, 8, 8>}, {pipeline_mode = #tpu.pipeline_mode<synchronous>, transform_indices = @transform_2, window_bounds = array<i64: 1, 8>}, {pipeline_mode = #tpu.pipeline_mode<synchronous>, transform_indices = @transform_3, window_bounds = array<i64: 1, 8>}, {pipeline_mode = #tpu.pipeline_mode<synchronous>, transform_indices = @transform_4, window_bounds = array<i64: 9, 8, 8>}, {pipeline_mode = #tpu.pipeline_mode<synchronous>, transform_indices = @transform_5, window_bounds = array<i64: 1, 8>}, {pipeline_mode = #tpu.pipeline_mode<synchronous>, transform_indices = @transform_6, window_bounds = array<i64: 1, 8>}, {pipeline_mode = #tpu.pipeline_mode<synchronous>, transform_indices = @transform_7, window_bounds = array<i64: 8, 8>}, {pipeline_mode = #tpu.pipeline_mode<synchronous>, transform_indices = @transform_8, window_bounds = array<i64: 1, 8>}, {pipeline_mode = #tpu.pipeline_mode<synchronous>, transform_indices = @transform_9, window_bounds = array<i64: 1, 8>}, {transform_indices = @transform_10, window_bounds = array<i64: 1, 8, 8, 8>}]} {
    %cst = arith.constant 0.000000e+00 : f32
    %0 = vector.broadcast %cst : f32 to vector<64x8xf32>
    %c0 = arith.constant 0 : index
    %c0_0 = arith.constant 0 : index
    %c0_1 = arith.constant 0 : index
    %c0_2 = arith.constant 0 : index
    %c0_3 = arith.constant 0 : index
    %1 = vector.load %arg1[%c0, %c0_0, %c0_1, %c0_2, %c0_3] : memref<1x4x9x9x8xbf16, #tpu.memory_space<vmem>>, vector<1x1x8x8x8xbf16>
    %2 = vector.shape_cast %1 : vector<1x1x8x8x8xbf16> to vector<8x8x8xbf16>
    %3 = vector.shape_cast %2 : vector<8x8x8xbf16> to vector<64x8xbf16>
    %c0_4 = arith.constant 0 : index
    %c0_5 = arith.constant 0 : index
    %c0_6 = arith.constant 0 : index
    %4 = vector.load %arg2[%c0_4, %c0_5, %c0_6] : memref<9x8x8xbf16, #tpu.memory_space<vmem>>, vector<1x8x8xbf16>
    %5 = vector.shape_cast %4 : vector<1x8x8xbf16> to vector<8x8xbf16>
    %cst_7 = arith.constant dense<0.000000e+00> : vector<64x8xf32>
    %6 = tpu.matmul %3, %5, %cst_7 {dimension_numbers = #tpu.dot_dimension_numbers<[1], [0], [0], [1], [0, 0, 1, 1], [], []>} : vector<64x8xbf16>, vector<8x8xbf16>, vector<64x8xf32> -> vector<64x8xf32>
    %7 = arith.addf %0, %6 : vector<64x8xf32>
    %c0_8 = arith.constant 0 : index
    %c1 = arith.constant 1 : index
    %c0_9 = arith.constant 0 : index
    %c0_10 = arith.constant 0 : index
    %c0_11 = arith.constant 0 : index
    %8 = vector.load %arg1[%c0_8, %c1, %c0_9, %c0_10, %c0_11] : memref<1x4x9x9x8xbf16, #tpu.memory_space<vmem>>, vector<1x1x8x8x8xbf16>
    %9 = vector.shape_cast %8 : vector<1x1x8x8x8xbf16> to vector<8x8x8xbf16>
    %10 = vector.shape_cast %9 : vector<8x8x8xbf16> to vector<64x8xbf16>
    %c1_12 = arith.constant 1 : index
    %c0_13 = arith.constant 0 : index
    %c0_14 = arith.constant 0 : index
    %11 = vector.load %arg2[%c1_12, %c0_13, %c0_14] : memref<9x8x8xbf16, #tpu.memory_space<vmem>>, vector<1x8x8xbf16>
    %12 = vector.shape_cast %11 : vector<1x8x8xbf16> to vector<8x8xbf16>
    %cst_15 = arith.constant dense<0.000000e+00> : vector<64x8xf32>
    %13 = tpu.matmul %10, %12, %cst_15 {dimension_numbers = #tpu.dot_dimension_numbers<[1], [0], [0], [1], [0, 0, 1, 1], [], []>} : vector<64x8xbf16>, vector<8x8xbf16>, vector<64x8xf32> -> vector<64x8xf32>
    %14 = arith.addf %7, %13 : vector<64x8xf32>
    %c0_16 = arith.constant 0 : index
    %c0_17 = arith.constant 0 : index
    %c0_18 = arith.constant 0 : index
    %c1_19 = arith.constant 1 : index
    %c0_20 = arith.constant 0 : index
    %15 = vector.load %arg1[%c0_16, %c0_17, %c0_18, %c1_19, %c0_20] : memref<1x4x9x9x8xbf16, #tpu.memory_space<vmem>>, vector<1x1x8x8x8xbf16>
    %16 = vector.shape_cast %15 : vector<1x1x8x8x8xbf16> to vector<8x8x8xbf16>
    %17 = vector.shape_cast %16 : vector<8x8x8xbf16> to vector<64x8xbf16>
    %c2 = arith.constant 2 : index
    %c0_21 = arith.constant 0 : index
    %c0_22 = arith.constant 0 : index
    %18 = vector.load %arg2[%c2, %c0_21, %c0_22] : memref<9x8x8xbf16, #tpu.memory_space<vmem>>, vector<1x8x8xbf16>
    %19 = vector.shape_cast %18 : vector<1x8x8xbf16> to vector<8x8xbf16>
    %cst_23 = arith.constant dense<0.000000e+00> : vector<64x8xf32>
    %20 = tpu.matmul %17, %19, %cst_23 {dimension_numbers = #tpu.dot_dimension_numbers<[1], [0], [0], [1], [0, 0, 1, 1], [], []>} : vector<64x8xbf16>, vector<8x8xbf16>, vector<64x8xf32> -> vector<64x8xf32>
    %21 = arith.addf %14, %20 : vector<64x8xf32>
    %c0_24 = arith.constant 0 : index
    %c2_25 = arith.constant 2 : index
    %c0_26 = arith.constant 0 : index
    %c0_27 = arith.constant 0 : index
    %c0_28 = arith.constant 0 : index
    %22 = vector.load %arg1[%c0_24, %c2_25, %c0_26, %c0_27, %c0_28] : memref<1x4x9x9x8xbf16, #tpu.memory_space<vmem>>, vector<1x1x8x8x8xbf16>
    %23 = vector.shape_cast %22 : vector<1x1x8x8x8xbf16> to vector<8x8x8xbf16>
    %24 = vector.shape_cast %23 : vector<8x8x8xbf16> to vector<64x8xbf16>
    %c3 = arith.constant 3 : index
    %c0_29 = arith.constant 0 : index
    %c0_30 = arith.constant 0 : index
    %25 = vector.load %arg2[%c3, %c0_29, %c0_30] : memref<9x8x8xbf16, #tpu.memory_space<vmem>>, vector<1x8x8xbf16>
    %26 = vector.shape_cast %25 : vector<1x8x8xbf16> to vector<8x8xbf16>
    %cst_31 = arith.constant dense<0.000000e+00> : vector<64x8xf32>
    %27 = tpu.matmul %24, %26, %cst_31 {dimension_numbers = #tpu.dot_dimension_numbers<[1], [0], [0], [1], [0, 0, 1, 1], [], []>} : vector<64x8xbf16>, vector<8x8xbf16>, vector<64x8xf32> -> vector<64x8xf32>
    %28 = arith.addf %21, %27 : vector<64x8xf32>
    %c0_32 = arith.constant 0 : index
    %c3_33 = arith.constant 3 : index
    %c0_34 = arith.constant 0 : index
    %c0_35 = arith.constant 0 : index
    %c0_36 = arith.constant 0 : index
    %29 = vector.load %arg1[%c0_32, %c3_33, %c0_34, %c0_35, %c0_36] : memref<1x4x9x9x8xbf16, #tpu.memory_space<vmem>>, vector<1x1x8x8x8xbf16>
    %30 = vector.shape_cast %29 : vector<1x1x8x8x8xbf16> to vector<8x8x8xbf16>
    %31 = vector.shape_cast %30 : vector<8x8x8xbf16> to vector<64x8xbf16>
    %c4 = arith.constant 4 : index
    %c0_37 = arith.constant 0 : index
    %c0_38 = arith.constant 0 : index
    %32 = vector.load %arg2[%c4, %c0_37, %c0_38] : memref<9x8x8xbf16, #tpu.memory_space<vmem>>, vector<1x8x8xbf16>
    %33 = vector.shape_cast %32 : vector<1x8x8xbf16> to vector<8x8xbf16>
    %cst_39 = arith.constant dense<0.000000e+00> : vector<64x8xf32>
    %34 = tpu.matmul %31, %33, %cst_39 {dimension_numbers = #tpu.dot_dimension_numbers<[1], [0], [0], [1], [0, 0, 1, 1], [], []>} : vector<64x8xbf16>, vector<8x8xbf16>, vector<64x8xf32> -> vector<64x8xf32>
    %35 = arith.addf %28, %34 : vector<64x8xf32>
    %c0_40 = arith.constant 0 : index
    %c2_41 = arith.constant 2 : index
    %c0_42 = arith.constant 0 : index
    %c1_43 = arith.constant 1 : index
    %c0_44 = arith.constant 0 : index
    %36 = vector.load %arg1[%c0_40, %c2_41, %c0_42, %c1_43, %c0_44] : memref<1x4x9x9x8xbf16, #tpu.memory_space<vmem>>, vector<1x1x8x8x8xbf16>
    %37 = vector.shape_cast %36 : vector<1x1x8x8x8xbf16> to vector<8x8x8xbf16>
    %38 = vector.shape_cast %37 : vector<8x8x8xbf16> to vector<64x8xbf16>
    %c5 = arith.constant 5 : index
    %c0_45 = arith.constant 0 : index
    %c0_46 = arith.constant 0 : index
    %39 = vector.load %arg2[%c5, %c0_45, %c0_46] : memref<9x8x8xbf16, #tpu.memory_space<vmem>>, vector<1x8x8xbf16>
    %40 = vector.shape_cast %39 : vector<1x8x8xbf16> to vector<8x8xbf16>
    %cst_47 = arith.constant dense<0.000000e+00> : vector<64x8xf32>
    %41 = tpu.matmul %38, %40, %cst_47 {dimension_numbers = #tpu.dot_dimension_numbers<[1], [0], [0], [1], [0, 0, 1, 1], [], []>} : vector<64x8xbf16>, vector<8x8xbf16>, vector<64x8xf32> -> vector<64x8xf32>
    %42 = arith.addf %35, %41 : vector<64x8xf32>
    %c0_48 = arith.constant 0 : index
    %c0_49 = arith.constant 0 : index
    %c1_50 = arith.constant 1 : index
    %c0_51 = arith.constant 0 : index
    %c0_52 = arith.constant 0 : index
    %43 = vector.load %arg1[%c0_48, %c0_49, %c1_50, %c0_51, %c0_52] : memref<1x4x9x9x8xbf16, #tpu.memory_space<vmem>>, vector<1x1x8x8x8xbf16>
    %44 = vector.shape_cast %43 : vector<1x1x8x8x8xbf16> to vector<8x8x8xbf16>
    %45 = vector.shape_cast %44 : vector<8x8x8xbf16> to vector<64x8xbf16>
    %c6 = arith.constant 6 : index
    %c0_53 = arith.constant 0 : index
    %c0_54 = arith.constant 0 : index
    %46 = vector.load %arg2[%c6, %c0_53, %c0_54] : memref<9x8x8xbf16, #tpu.memory_space<vmem>>, vector<1x8x8xbf16>
    %47 = vector.shape_cast %46 : vector<1x8x8xbf16> to vector<8x8xbf16>
    %cst_55 = arith.constant dense<0.000000e+00> : vector<64x8xf32>
    %48 = tpu.matmul %45, %47, %cst_55 {dimension_numbers = #tpu.dot_dimension_numbers<[1], [0], [0], [1], [0, 0, 1, 1], [], []>} : vector<64x8xbf16>, vector<8x8xbf16>, vector<64x8xf32> -> vector<64x8xf32>
    %49 = arith.addf %42, %48 : vector<64x8xf32>
    %c0_56 = arith.constant 0 : index
    %c1_57 = arith.constant 1 : index
    %c1_58 = arith.constant 1 : index
    %c0_59 = arith.constant 0 : index
    %c0_60 = arith.constant 0 : index
    %50 = vector.load %arg1[%c0_56, %c1_57, %c1_58, %c0_59, %c0_60] : memref<1x4x9x9x8xbf16, #tpu.memory_space<vmem>>, vector<1x1x8x8x8xbf16>
    %51 = vector.shape_cast %50 : vector<1x1x8x8x8xbf16> to vector<8x8x8xbf16>
    %52 = vector.shape_cast %51 : vector<8x8x8xbf16> to vector<64x8xbf16>
    %c7 = arith.constant 7 : index
    %c0_61 = arith.constant 0 : index
    %c0_62 = arith.constant 0 : index
    %53 = vector.load %arg2[%c7, %c0_61, %c0_62] : memref<9x8x8xbf16, #tpu.memory_space<vmem>>, vector<1x8x8xbf16>
    %54 = vector.shape_cast %53 : vector<1x8x8xbf16> to vector<8x8xbf16>
    %cst_63 = arith.constant dense<0.000000e+00> : vector<64x8xf32>
    %55 = tpu.matmul %52, %54, %cst_63 {dimension_numbers = #tpu.dot_dimension_numbers<[1], [0], [0], [1], [0, 0, 1, 1], [], []>} : vector<64x8xbf16>, vector<8x8xbf16>, vector<64x8xf32> -> vector<64x8xf32>
    %56 = arith.addf %49, %55 : vector<64x8xf32>
    %c0_64 = arith.constant 0 : index
    %c0_65 = arith.constant 0 : index
    %c1_66 = arith.constant 1 : index
    %c1_67 = arith.constant 1 : index
    %c0_68 = arith.constant 0 : index
    %57 = vector.load %arg1[%c0_64, %c0_65, %c1_66, %c1_67, %c0_68] : memref<1x4x9x9x8xbf16, #tpu.memory_space<vmem>>, vector<1x1x8x8x8xbf16>
    %58 = vector.shape_cast %57 : vector<1x1x8x8x8xbf16> to vector<8x8x8xbf16>
    %59 = vector.shape_cast %58 : vector<8x8x8xbf16> to vector<64x8xbf16>
    %c8 = arith.constant 8 : index
    %c0_69 = arith.constant 0 : index
    %c0_70 = arith.constant 0 : index
    %60 = vector.load %arg2[%c8, %c0_69, %c0_70] : memref<9x8x8xbf16, #tpu.memory_space<vmem>>, vector<1x8x8xbf16>
    %61 = vector.shape_cast %60 : vector<1x8x8xbf16> to vector<8x8xbf16>
    %cst_71 = arith.constant dense<0.000000e+00> : vector<64x8xf32>
    %62 = tpu.matmul %59, %61, %cst_71 {dimension_numbers = #tpu.dot_dimension_numbers<[1], [0], [0], [1], [0, 0, 1, 1], [], []>} : vector<64x8xbf16>, vector<8x8xbf16>, vector<64x8xf32> -> vector<64x8xf32>
    %63 = arith.addf %56, %62 : vector<64x8xf32>
    %c0_72 = arith.constant 0 : index
    %c0_73 = arith.constant 0 : index
    %64 = vector.load %arg3[%c0_72, %c0_73] : memref<1x8xf32, #tpu.memory_space<vmem>>, vector<1x8xf32>
    %65 = vector.broadcast %64 : vector<1x8xf32> to vector<64x8xf32>
    %66 = arith.mulf %63, %65 : vector<64x8xf32>
    %c0_74 = arith.constant 0 : index
    %c0_75 = arith.constant 0 : index
    %67 = vector.load %arg4[%c0_74, %c0_75] : memref<1x8xf32, #tpu.memory_space<vmem>>, vector<1x8xf32>
    %68 = vector.broadcast %67 : vector<1x8xf32> to vector<64x8xf32>
    %69 = arith.addf %66, %68 : vector<64x8xf32>
    %cst_76 = arith.constant 0.000000e+00 : f32
    %70 = vector.broadcast %cst_76 : f32 to vector<64x8xf32>
    %71 = arith.maximumf %69, %70 : vector<64x8xf32>
    %cst_77 = arith.constant 0.000000e+00 : f32
    %72 = vector.broadcast %cst_77 : f32 to vector<10x10x8xf32>
    %c0_78 = arith.constant 0 : index
    %c0_79 = arith.constant 0 : index
    %c0_80 = arith.constant 0 : index
    %73 = vector.load %arg12[%c0_78, %c0_79, %c0_80] : memref<10x10x8xf32, #tpu.memory_space<vmem>>, vector<10x10x8xf32>
    tpu.vector_store %arg12[%c0_78, %c0_79, %c0_80], %72 {strides = array<i32>} : memref<10x10x8xf32, #tpu.memory_space<vmem>>, vector<10x10x8xf32>,
    %74 = vector.shape_cast %71 : vector<64x8xf32> to vector<8x8x8xf32>
    %c1_81 = arith.constant 1 : index
    %c1_82 = arith.constant 1 : index
    %c0_83 = arith.constant 0 : index
    %75 = vector.load %arg12[%c1_81, %c1_82, %c0_83] : memref<10x10x8xf32, #tpu.memory_space<vmem>>, vector<8x8x8xf32>
    tpu.vector_store %arg12[%c1_81, %c1_82, %c0_83], %74 {strides = array<i32>} : memref<10x10x8xf32, #tpu.memory_space<vmem>>, vector<8x8x8xf32>,
    %cst_84 = arith.constant 0.000000e+00 : f32
    %76 = vector.broadcast %cst_84 : f32 to vector<64x8xf32>
    %c0_85 = arith.constant 0 : index
    %c0_86 = arith.constant 0 : index
    %c0_87 = arith.constant 0 : index
    %77 = vector.load %arg12[%c0_85, %c0_86, %c0_87] : memref<10x10x8xf32, #tpu.memory_space<vmem>>, vector<8x8x8xf32>
    %78 = vector.shape_cast %77 : vector<8x8x8xf32> to vector<64x8xf32>
    %79 = arith.truncf %78 : vector<64x8xf32> to vector<64x8xbf16>
    %c0_88 = arith.constant 0 : index
    %c0_89 = arith.constant 0 : index
    %c0_90 = arith.constant 0 : index
    %80 = vector.load %arg5[%c0_88, %c0_89, %c0_90] : memref<9x8x8xbf16, #tpu.memory_space<vmem>>, vector<1x8x8xbf16>
    %81 = vector.shape_cast %80 : vector<1x8x8xbf16> to vector<8x8xbf16>
    %cst_91 = arith.constant dense<0.000000e+00> : vector<64x8xf32>
    %82 = tpu.matmul %79, %81, %cst_91 {dimension_numbers = #tpu.dot_dimension_numbers<[1], [0], [0], [1], [0, 0, 1, 1], [], []>} : vector<64x8xbf16>, vector<8x8xbf16>, vector<64x8xf32> -> vector<64x8xf32>
    %83 = arith.addf %76, %82 : vector<64x8xf32>
    %c0_92 = arith.constant 0 : index
    %c1_93 = arith.constant 1 : index
    %c0_94 = arith.constant 0 : index
    %84 = vector.load %arg12[%c0_92, %c1_93, %c0_94] : memref<10x10x8xf32, #tpu.memory_space<vmem>>, vector<8x8x8xf32>
    %85 = vector.shape_cast %84 : vector<8x8x8xf32> to vector<64x8xf32>
    %86 = arith.truncf %85 : vector<64x8xf32> to vector<64x8xbf16>
    %c1_95 = arith.constant 1 : index
    %c0_96 = arith.constant 0 : index
    %c0_97 = arith.constant 0 : index
    %87 = vector.load %arg5[%c1_95, %c0_96, %c0_97] : memref<9x8x8xbf16, #tpu.memory_space<vmem>>, vector<1x8x8xbf16>
    %88 = vector.shape_cast %87 : vector<1x8x8xbf16> to vector<8x8xbf16>
    %cst_98 = arith.constant dense<0.000000e+00> : vector<64x8xf32>
    %89 = tpu.matmul %86, %88, %cst_98 {dimension_numbers = #tpu.dot_dimension_numbers<[1], [0], [0], [1], [0, 0, 1, 1], [], []>} : vector<64x8xbf16>, vector<8x8xbf16>, vector<64x8xf32> -> vector<64x8xf32>
    %90 = arith.addf %83, %89 : vector<64x8xf32>
    %c0_99 = arith.constant 0 : index
    %c2_100 = arith.constant 2 : index
    %c0_101 = arith.constant 0 : index
    %91 = vector.load %arg12[%c0_99, %c2_100, %c0_101] : memref<10x10x8xf32, #tpu.memory_space<vmem>>, vector<8x8x8xf32>
    %92 = vector.shape_cast %91 : vector<8x8x8xf32> to vector<64x8xf32>
    %93 = arith.truncf %92 : vector<64x8xf32> to vector<64x8xbf16>
    %c2_102 = arith.constant 2 : index
    %c0_103 = arith.constant 0 : index
    %c0_104 = arith.constant 0 : index
    %94 = vector.load %arg5[%c2_102, %c0_103, %c0_104] : memref<9x8x8xbf16, #tpu.memory_space<vmem>>, vector<1x8x8xbf16>
    %95 = vector.shape_cast %94 : vector<1x8x8xbf16> to vector<8x8xbf16>
    %cst_105 = arith.constant dense<0.000000e+00> : vector<64x8xf32>
    %96 = tpu.matmul %93, %95, %cst_105 {dimension_numbers = #tpu.dot_dimension_numbers<[1], [0], [0], [1], [0, 0, 1, 1], [], []>} : vector<64x8xbf16>, vector<8x8xbf16>, vector<64x8xf32> -> vector<64x8xf32>
    %97 = arith.addf %90, %96 : vector<64x8xf32>
    %c1_106 = arith.constant 1 : index
    %c0_107 = arith.constant 0 : index
    %c0_108 = arith.constant 0 : index
    %98 = vector.load %arg12[%c1_106, %c0_107, %c0_108] : memref<10x10x8xf32, #tpu.memory_space<vmem>>, vector<8x8x8xf32>
    %99 = vector.shape_cast %98 : vector<8x8x8xf32> to vector<64x8xf32>
    %100 = arith.truncf %99 : vector<64x8xf32> to vector<64x8xbf16>
    %c3_109 = arith.constant 3 : index
    %c0_110 = arith.constant 0 : index
    %c0_111 = arith.constant 0 : index
    %101 = vector.load %arg5[%c3_109, %c0_110, %c0_111] : memref<9x8x8xbf16, #tpu.memory_space<vmem>>, vector<1x8x8xbf16>
    %102 = vector.shape_cast %101 : vector<1x8x8xbf16> to vector<8x8xbf16>
    %cst_112 = arith.constant dense<0.000000e+00> : vector<64x8xf32>
    %103 = tpu.matmul %100, %102, %cst_112 {dimension_numbers = #tpu.dot_dimension_numbers<[1], [0], [0], [1], [0, 0, 1, 1], [], []>} : vector<64x8xbf16>, vector<8x8xbf16>, vector<64x8xf32> -> vector<64x8xf32>
    %104 = arith.addf %97, %103 : vector<64x8xf32>
    %c1_113 = arith.constant 1 : index
    %c1_114 = arith.constant 1 : index
    %c0_115 = arith.constant 0 : index
    %105 = vector.load %arg12[%c1_113, %c1_114, %c0_115] : memref<10x10x8xf32, #tpu.memory_space<vmem>>, vector<8x8x8xf32>
    %106 = vector.shape_cast %105 : vector<8x8x8xf32> to vector<64x8xf32>
    %107 = arith.truncf %106 : vector<64x8xf32> to vector<64x8xbf16>
    %c4_116 = arith.constant 4 : index
    %c0_117 = arith.constant 0 : index
    %c0_118 = arith.constant 0 : index
    %108 = vector.load %arg5[%c4_116, %c0_117, %c0_118] : memref<9x8x8xbf16, #tpu.memory_space<vmem>>, vector<1x8x8xbf16>
    %109 = vector.shape_cast %108 : vector<1x8x8xbf16> to vector<8x8xbf16>
    %cst_119 = arith.constant dense<0.000000e+00> : vector<64x8xf32>
    %110 = tpu.matmul %107, %109, %cst_119 {dimension_numbers = #tpu.dot_dimension_numbers<[1], [0], [0], [1], [0, 0, 1, 1], [], []>} : vector<64x8xbf16>, vector<8x8xbf16>, vector<64x8xf32> -> vector<64x8xf32>
    %111 = arith.addf %104, %110 : vector<64x8xf32>
    %c1_120 = arith.constant 1 : index
    %c2_121 = arith.constant 2 : index
    %c0_122 = arith.constant 0 : index
    %112 = vector.load %arg12[%c1_120, %c2_121, %c0_122] : memref<10x10x8xf32, #tpu.memory_space<vmem>>, vector<8x8x8xf32>
    %113 = vector.shape_cast %112 : vector<8x8x8xf32> to vector<64x8xf32>
    %114 = arith.truncf %113 : vector<64x8xf32> to vector<64x8xbf16>
    %c5_123 = arith.constant 5 : index
    %c0_124 = arith.constant 0 : index
    %c0_125 = arith.constant 0 : index
    %115 = vector.load %arg5[%c5_123, %c0_124, %c0_125] : memref<9x8x8xbf16, #tpu.memory_space<vmem>>, vector<1x8x8xbf16>
    %116 = vector.shape_cast %115 : vector<1x8x8xbf16> to vector<8x8xbf16>
    %cst_126 = arith.constant dense<0.000000e+00> : vector<64x8xf32>
    %117 = tpu.matmul %114, %116, %cst_126 {dimension_numbers = #tpu.dot_dimension_numbers<[1], [0], [0], [1], [0, 0, 1, 1], [], []>} : vector<64x8xbf16>, vector<8x8xbf16>, vector<64x8xf32> -> vector<64x8xf32>
    %118 = arith.addf %111, %117 : vector<64x8xf32>
    %c2_127 = arith.constant 2 : index
    %c0_128 = arith.constant 0 : index
    %c0_129 = arith.constant 0 : index
    %119 = vector.load %arg12[%c2_127, %c0_128, %c0_129] : memref<10x10x8xf32, #tpu.memory_space<vmem>>, vector<8x8x8xf32>
    %120 = vector.shape_cast %119 : vector<8x8x8xf32> to vector<64x8xf32>
    %121 = arith.truncf %120 : vector<64x8xf32> to vector<64x8xbf16>
    %c6_130 = arith.constant 6 : index
    %c0_131 = arith.constant 0 : index
    %c0_132 = arith.constant 0 : index
    %122 = vector.load %arg5[%c6_130, %c0_131, %c0_132] : memref<9x8x8xbf16, #tpu.memory_space<vmem>>, vector<1x8x8xbf16>
    %123 = vector.shape_cast %122 : vector<1x8x8xbf16> to vector<8x8xbf16>
    %cst_133 = arith.constant dense<0.000000e+00> : vector<64x8xf32>
    %124 = tpu.matmul %121, %123, %cst_133 {dimension_numbers = #tpu.dot_dimension_numbers<[1], [0], [0], [1], [0, 0, 1, 1], [], []>} : vector<64x8xbf16>, vector<8x8xbf16>, vector<64x8xf32> -> vector<64x8xf32>
    %125 = arith.addf %118, %124 : vector<64x8xf32>
    %c2_134 = arith.constant 2 : index
    %c1_135 = arith.constant 1 : index
    %c0_136 = arith.constant 0 : index
    %126 = vector.load %arg12[%c2_134, %c1_135, %c0_136] : memref<10x10x8xf32, #tpu.memory_space<vmem>>, vector<8x8x8xf32>
    %127 = vector.shape_cast %126 : vector<8x8x8xf32> to vector<64x8xf32>
    %128 = arith.truncf %127 : vector<64x8xf32> to vector<64x8xbf16>
    %c7_137 = arith.constant 7 : index
    %c0_138 = arith.constant 0 : index
    %c0_139 = arith.constant 0 : index
    %129 = vector.load %arg5[%c7_137, %c0_138, %c0_139] : memref<9x8x8xbf16, #tpu.memory_space<vmem>>, vector<1x8x8xbf16>
    %130 = vector.shape_cast %129 : vector<1x8x8xbf16> to vector<8x8xbf16>
    %cst_140 = arith.constant dense<0.000000e+00> : vector<64x8xf32>
    %131 = tpu.matmul %128, %130, %cst_140 {dimension_numbers = #tpu.dot_dimension_numbers<[1], [0], [0], [1], [0, 0, 1, 1], [], []>} : vector<64x8xbf16>, vector<8x8xbf16>, vector<64x8xf32> -> vector<64x8xf32>
    %132 = arith.addf %125, %131 : vector<64x8xf32>
    %c2_141 = arith.constant 2 : index
    %c2_142 = arith.constant 2 : index
    %c0_143 = arith.constant 0 : index
    %133 = vector.load %arg12[%c2_141, %c2_142, %c0_143] : memref<10x10x8xf32, #tpu.memory_space<vmem>>, vector<8x8x8xf32>
    %134 = vector.shape_cast %133 : vector<8x8x8xf32> to vector<64x8xf32>
    %135 = arith.truncf %134 : vector<64x8xf32> to vector<64x8xbf16>
    %c8_144 = arith.constant 8 : index
    %c0_145 = arith.constant 0 : index
    %c0_146 = arith.constant 0 : index
    %136 = vector.load %arg5[%c8_144, %c0_145, %c0_146] : memref<9x8x8xbf16, #tpu.memory_space<vmem>>, vector<1x8x8xbf16>
    %137 = vector.shape_cast %136 : vector<1x8x8xbf16> to vector<8x8xbf16>
    %cst_147 = arith.constant dense<0.000000e+00> : vector<64x8xf32>
    %138 = tpu.matmul %135, %137, %cst_147 {dimension_numbers = #tpu.dot_dimension_numbers<[1], [0], [0], [1], [0, 0, 1, 1], [], []>} : vector<64x8xbf16>, vector<8x8xbf16>, vector<64x8xf32> -> vector<64x8xf32>
    %139 = arith.addf %132, %138 : vector<64x8xf32>
    %c0_148 = arith.constant 0 : index
    %c0_149 = arith.constant 0 : index
    %140 = vector.load %arg6[%c0_148, %c0_149] : memref<1x8xf32, #tpu.memory_space<vmem>>, vector<1x8xf32>
    %141 = vector.broadcast %140 : vector<1x8xf32> to vector<64x8xf32>
    %142 = arith.mulf %139, %141 : vector<64x8xf32>
    %c0_150 = arith.constant 0 : index
    %c0_151 = arith.constant 0 : index
    %143 = vector.load %arg7[%c0_150, %c0_151] : memref<1x8xf32, #tpu.memory_space<vmem>>, vector<1x8xf32>
    %144 = vector.broadcast %143 : vector<1x8xf32> to vector<64x8xf32>
    %145 = arith.addf %142, %144 : vector<64x8xf32>
    %c0_152 = arith.constant 0 : index
    %c3_153 = arith.constant 3 : index
    %c0_154 = arith.constant 0 : index
    %c0_155 = arith.constant 0 : index
    %c0_156 = arith.constant 0 : index
    %146 = vector.load %arg1[%c0_152, %c3_153, %c0_154, %c0_155, %c0_156] : memref<1x4x9x9x8xbf16, #tpu.memory_space<vmem>>, vector<1x1x8x8x8xbf16>
    %147 = vector.shape_cast %146 : vector<1x1x8x8x8xbf16> to vector<8x8x8xbf16>
    %148 = vector.shape_cast %147 : vector<8x8x8xbf16> to vector<64x8xbf16>
    %c0_157 = arith.constant 0 : index
    %c0_158 = arith.constant 0 : index
    %149 = vector.load %arg8[%c0_157, %c0_158] : memref<8x8xbf16, #tpu.memory_space<vmem>>, vector<8x8xbf16>
    %cst_159 = arith.constant dense<0.000000e+00> : vector<64x8xf32>
    %150 = tpu.matmul %148, %149, %cst_159 {dimension_numbers = #tpu.dot_dimension_numbers<[1], [0], [0], [1], [0, 0, 1, 1], [], []>} : vector<64x8xbf16>, vector<8x8xbf16>, vector<64x8xf32> -> vector<64x8xf32>
    %c0_160 = arith.constant 0 : index
    %c0_161 = arith.constant 0 : index
    %151 = vector.load %arg9[%c0_160, %c0_161] : memref<1x8xf32, #tpu.memory_space<vmem>>, vector<1x8xf32>
    %152 = vector.broadcast %151 : vector<1x8xf32> to vector<64x8xf32>
    %153 = arith.mulf %150, %152 : vector<64x8xf32>
    %c0_162 = arith.constant 0 : index
    %c0_163 = arith.constant 0 : index
    %154 = vector.load %arg10[%c0_162, %c0_163] : memref<1x8xf32, #tpu.memory_space<vmem>>, vector<1x8xf32>
    %155 = vector.broadcast %154 : vector<1x8xf32> to vector<64x8xf32>
    %156 = arith.addf %153, %155 : vector<64x8xf32>
    %157 = arith.addf %145, %156 : vector<64x8xf32>
    %158 = vector.shape_cast %157 : vector<64x8xf32> to vector<8x8x8xf32>
    %c0_164 = arith.constant 0 : index
    %c0_165 = arith.constant 0 : index
    %c0_166 = arith.constant 0 : index
    %c0_167 = arith.constant 0 : index
    %159 = vector.load %arg11[%c0_164, %c0_165, %c0_166, %c0_167] : memref<1x8x8x8xf32, #tpu.memory_space<vmem>>, vector<1x8x8x8xf32>
    %160 = vector.shape_cast %159 : vector<1x8x8x8xf32> to vector<8x8x8xf32>
    %161 = vector.shape_cast %158 : vector<8x8x8xf32> to vector<1x8x8x8xf32>
    tpu.vector_store %arg11[%c0_164, %c0_165, %c0_166, %c0_167], %161 {strides = array<i32>} : memref<1x8x8x8xf32, #tpu.memory_space<vmem>>, vector<1x8x8x8xf32>,
    return
  }
  func.func @transform_0(%arg0: i32) -> (i32, i32, i32, i32, i32) {
    %c0_i32 = arith.constant 0 : i32
    %c0_i32_0 = arith.constant 0 : i32
    %c0_i32_1 = arith.constant 0 : i32
    %c0_i32_2 = arith.constant 0 : i32
    %c0_i32_3 = arith.constant 0 : i32
    return %arg0, %c0_i32, %c0_i32_0, %c0_i32_1, %c0_i32_2 : i32, i32, i32, i32, i32
  }
  func.func @transform_1(%arg0: i32) -> (i32, i32, i32) {
    %c0_i32 = arith.constant 0 : i32
    %c0_i32_0 = arith.constant 0 : i32
    %c0_i32_1 = arith.constant 0 : i32
    %c0_i32_2 = arith.constant 0 : i32
    return %c0_i32, %c0_i32_0, %c0_i32_1 : i32, i32, i32
  }
  func.func @transform_2(%arg0: i32) -> (i32, i32) {
    %c0_i32 = arith.constant 0 : i32
    %c0_i32_0 = arith.constant 0 : i32
    %c0_i32_1 = arith.constant 0 : i32
    return %c0_i32, %c0_i32_0 : i32, i32
  }
  func.func @transform_3(%arg0: i32) -> (i32, i32) {
    %c0_i32 = arith.constant 0 : i32
    %c0_i32_0 = arith.constant 0 : i32
    %c0_i32_1 = arith.constant 0 : i32
    return %c0_i32, %c0_i32_0 : i32, i32
  }
  func.func @transform_4(%arg0: i32) -> (i32, i32, i32) {
    %c0_i32 = arith.constant 0 : i32
    %c0_i32_0 = arith.constant 0 : i32
    %c0_i32_1 = arith.constant 0 : i32
    %c0_i32_2 = arith.constant 0 : i32
    return %c0_i32, %c0_i32_0, %c0_i32_1 : i32, i32, i32
  }
  func.func @transform_5(%arg0: i32) -> (i32, i32) {
    %c0_i32 = arith.constant 0 : i32
    %c0_i32_0 = arith.constant 0 : i32
    %c0_i32_1 = arith.constant 0 : i32
    return %c0_i32, %c0_i32_0 : i32, i32
  }
  func.func @transform_6(%arg0: i32) -> (i32, i32) {
    %c0_i32 = arith.constant 0 : i32
    %c0_i32_0 = arith.constant 0 : i32
    %c0_i32_1 = arith.constant 0 : i32
    return %c0_i32, %c0_i32_0 : i32, i32
  }
  func.func @transform_7(%arg0: i32) -> (i32, i32) {
    %c0_i32 = arith.constant 0 : i32
    %c0_i32_0 = arith.constant 0 : i32
    %c0_i32_1 = arith.constant 0 : i32
    return %c0_i32, %c0_i32_0 : i32, i32
  }
  func.func @transform_8(%arg0: i32) -> (i32, i32) {
    %c0_i32 = arith.constant 0 : i32
    %c0_i32_0 = arith.constant 0 : i32
    %c0_i32_1 = arith.constant 0 : i32
    return %c0_i32, %c0_i32_0 : i32, i32
  }
  func.func @transform_9(%arg0: i32) -> (i32, i32) {
    %c0_i32 = arith.constant 0 : i32
    %c0_i32_0 = arith.constant 0 : i32
    %c0_i32_1 = arith.constant 0 : i32
    return %c0_i32, %c0_i32_0 : i32, i32
  }
  func.func @transform_10(%arg0: i32) -> (i32, i32, i32, i32) {
    %c0_i32 = arith.constant 0 : i32
    %c0_i32_0 = arith.constant 0 : i32
    %c0_i32_1 = arith.constant 0 : i32
    %c0_i32_2 = arith.constant 0 : i32
    return %arg0, %c0_i32, %c0_i32_0, %c0_i32_1 : i32, i32, i32, i32
  }
}

</mosaic_0001>

<bundles_post_ra>
// kernel: _lambda_.1
= control target key start
LH: loop header
LB: loop body
LE: loop exit
PB: predicated region body
PF: predicated region fallthrough
CT: control target
= control target key end

     0   :  { %s2666_s13 = smov 0   ;;  %s3358_s0 = inlined_call_operand.vmem [shape: bf16[2,4,9,9,8], index: 0, kind: input, shape index: {}]   ;;  %s3359_s1 = inlined_call_operand.vmem [shape: bf16[9,8,8], index: 1, kind: input, shape index: {}]   ;;  %s3360_s2 = inlined_call_operand.vmem [shape: f32[1,8], index: 2, kind: input, shape index: {}]   ;;  %s3361_s3 = inlined_call_operand.vmem [shape: f32[1,8], index: 3, kind: input, shape index: {}]   ;;  %s3362_s4 = inlined_call_operand.vmem [shape: bf16[9,8,8], index: 4, kind: input, shape index: {}]   ;;  %s3363_s5 = inlined_call_operand.vmem [shape: f32[1,8], index: 5, kind: input, shape index: {}]   ;;  %s3364_s6 = inlined_call_operand.vmem [shape: f32[1,8], index: 6, kind: input, shape index: {}]   ;;  %s3365_s7 = inlined_call_operand.vmem [shape: bf16[8,8], index: 7, kind: input, shape index: {}]   ;;  %s3366_s8 = inlined_call_operand.vmem [shape: f32[1,8], index: 8, kind: input, shape index: {}]   ;;  %s3367_s9 = inlined_call_operand.vmem [shape: f32[1,8], index: 9, kind: input, shape index: {}]   ;;  %s3368_s10 = inlined_call_operand.vmem [shape: f32[2,8,8,8], index: 10, kind: output, shape index: {}]  }
   0x1 LB: > { %s2260_s14 = sadd.s32 4294967295, %s2608_s13   ;;  %p2264_p0 = scmp.ge.s32.totalorder %s2608_s13, 1  ;;  %s2608_s13 = sphi %s2666_s13, %s20_s13  }
   0x2   : > { %p312_p1 = scmp.lt.s32.totalorder %s2608_s13, 3 }
   0x4   : > { %p313_p2 = pnand %p2264_p0, %p312_p1 }
   0x5   : > { %p350_p3 = scmp.lt.s32.totalorder (!%p313_p2), %s2260_s14, 1 }
   0x6   : > { %316 = sbr.rel (%p313_p2) target bundleno = 608 (0x260), region = 60 }
   0xb   : > { %v2276_v0 = vld [vmem:[%s3359_s1 + $0x4] sm:$0xf]  ;;  %vm414_vm0 = vcmask 1043456   ;;  %v2330_v2 = vld [vmem:[%s3359_s1 + $0xc] sm:$0xf]  ;;  %s3372_s14 = smov (!%p350_p3, %s2260_s14), 1 }
   0xc   : > { %v416_v1 = vsel %vm414_vm0, %v2276_v0, 0  ;;  %v369_v3 = vld [vmem:[%s3359_s1] sm:$0xf]  ;;  %v752_v4 = vsel %vm414_vm0, %v2330_v2, 0  ;;  %v2317_v6 = vld [vmem:[%s3359_s1 + $0x8] sm:$0xf] }
   0xd   : > { %425 = vmatpush.bf16.msra.mxu0 %v416_v1  ;;  %2583 = vmatpush.bf16.msra.mxu3 %v416_v1  ;;  %v480_v5 = vsel %vm414_vm0, %v369_v3, 0  ;;  %v669_v7 = vsel %vm414_vm0, %v2317_v6, 0  ;;  %s2586_s23 = smul.u32 288, %s3372_s14  ;;  %vm401_vm1 = vcmask 64512   ;;  %vm527_vm2 = vsmask.f32 3328 }
   0xe   : > { %2584 = vmatpush.bf16.msra.mxu1 %v480_v5  ;;  %2585 = vmatpush.bf16.msra.mxu2 %v669_v7  ;;  %vm528_vm3 = vsmask.f32 7440  ;;  %vm1461_vm5 = vcmask 58368   ;;  %s2554_s16 = sshll.u32 %s3372_s14, 6 }
   0xf   : > { %s2696_s26 = scalar_lea.vmem %s3358_s0, %s2586_s23  ;;  %vm2713_vm4 = vmor %vm527_vm2, %vm528_vm3  ;;  %s3288_s19 = scalar_lea.vmem %s3368_s10, %s2554_s16 }
  0x10   : > { %v2279_v8 = vld [vmem:[%s2696_s26 + $0x48] sm:$0xf]  ;;  %v2559_v9 = vld [vmem:[%s2696_s26 + $0x4c] sm:$0xf0]  ;;  %v2283_v10 = vld [vmem:[%s2696_s26 + $0x58] sm:$0xf] }
  0x11   : > { %761 = vmatpush.bf16.msrb.mxu3 %v752_v4  ;;  %489 = vmatpush.bf16.msrb.mxu0 %v480_v5  ;;  %v2280_v11 = vor.u32 %v2559_v9, %v2279_v8  ;;  %v2560_v12 = vld [vmem:[%s2696_s26 + $0x5c] sm:$0xf0]  ;;  %v2303_v13 = vld [vmem:[%s2696_s26 + $0x10] sm:$0xf]  ;;  %v2556_v14 = vld [vmem:[%s2696_s26 + $0x14] sm:$0xf0] }
  0x12   : > { %v2284_v15 = vor.u32 %v2560_v12, %v2283_v10  ;;  %v2304_v16 = vor.u32 %v2556_v14, %v2303_v13  ;;  %v515_v17 = vld [vmem:[%s2696_s26 + $0x10] sm:$0xf]  ;;  %v516_v18 = vld [vmem:[%s2696_s26 + $0x14] sm:$0x1]  ;;  %v517_v19 = vld [vmem:[%s2696_s26 + $0x18] sm:$0xf] }
  0x13   : > { %2293 = vmatmul.msk.bf16.vlgmr.msra.gmra.mxu0 %vm401_vm1, %v2280_v11  ;;  %v518_v20 = vld [vmem:[%s2696_s26 + $0x1c] sm:$0x1]  ;;  %v559_v21 = vshrl.u32 %v515_v17, 16  ;;  %v562_v22 = vshll.u32 %v515_v17, 16  ;;  %v568_v23 = vshll.u32 %v516_v18, 16  ;;  %v573_v24 = vshrl.u32 %v517_v19, 16 }
  0x14   : > { %2294 = vmatmul.msk.bf16.vlgmr.msra.gmra.mxu3 %vm401_vm1, %v2284_v15  ;;  %2314 = vmatmul.msk.bf16.vlgmr.msra.gmra.mxu1 %vm401_vm1, %v2304_v16  ;;  %v576_v25 = vshll.u32 %v517_v19, 16  ;;  %v582_v26 = vshll.u32 %v518_v20, 16  ;;  %v2287_v33 = vld [vmem:[%s2696_s26 + $0x68] sm:$0xf]  ;;  %v519_v34 = vld [vmem:[%s2696_s26 + $0x20] sm:$0xf] }
  0x15   : > { %v561_v27 = vrot.slane %v559_v21, 4  ;;  %v564_v28 = vrot.slane %v562_v22, 5  ;;  %v575_v29 = vrot.slane %v573_v24, 4  ;;  %678 = vmatpush.bf16.msra.mxu0 %v669_v7  ;;  %v570_v32 = vrot.slane %v568_v23, 5  ;;  %v521_v38 = vld [vmem:[%s2696_s26 + $0x28] sm:$0xf] }
  0x16   : > { %v578_v30 = vrot.slane %v576_v25, 5  ;;  %v584_v37 = vrot.slane %v582_v26, 5  ;;  %v587_v39 = vshrl.u32 %v519_v34, 16  ;;  %v590_v40 = vshll.u32 %v519_v34, 16  ;;  %v2561_v42 = vld [vmem:[%s2696_s26 + $0x6c] sm:$0xf0] }
  0x17   : > { %v565_v31 = vor.u32 %v564_v28, %v561_v27  ;;  %v601_v43 = vshrl.u32 %v521_v38, 16  ;;  %v604_v44 = vshll.u32 %v521_v38, 16  ;;  %v2299_v46 = vld [vmem:[%s2696_s26] sm:$0xf]  ;;  %v520_v47 = vld [vmem:[%s2696_s26 + $0x24] sm:$0x1]  ;;  %v2288_v57 = vor.u32 %v2561_v42, %v2287_v33 }
  0x18   : > { %v579_v36 = vor.u32 %v578_v30, %v575_v29  ;;  %v589_v48 = vrot.slane %v587_v39, 4  ;;  %v592_v49 = vrot.slane %v590_v40, 5  ;;  %v522_v51 = vld [vmem:[%s2696_s26 + $0x2c] sm:$0x1]  ;;  %v511_v54 = vld [vmem:[%s2696_s26] sm:$0xf] }
  0x19   : > { %v566_v41 = vrot.slane %v565_v31, 4  ;;  %v603_v52 = vrot.slane %v601_v43, 4  ;;  %v606_v53 = vrot.slane %v604_v44, 5  ;;  %v2555_v58 = vld [vmem:[%s2696_s26 + $0x4] sm:$0xf0]  ;;  %v596_v0 = vshll.u32 %v520_v47, 16 }
  0x1a   : > { %v580_v45 = vrot.slane %v579_v36, 4  ;;  %v2307_v59 = vld [vmem:[%s2696_s26 + $0x20] sm:$0xf]  ;;  %v513_v60 = vld [vmem:[%s2696_s26 + $0x8] sm:$0xf]  ;;  %v593_v63 = vor.u32 %v592_v49, %v589_v48  ;;  %v531_v2 = vshrl.u32 %v511_v54, 16  ;;  %v2300_v9 = vor.u32 %v2555_v58, %v2299_v46 }
  0x1b   : > { %v571_v50 = vsel %vm2713_vm4, %v566_v41, %v570_v32  ;;  %v2557_v62 = vld [vmem:[%s2696_s26 + $0x24] sm:$0xf0]  ;;  %v512_v1 = vld [vmem:[%s2696_s26 + $0x4] sm:$0x1]  ;;  %v607_v3 = vor.u32 %v606_v53, %v603_v52  ;;  %v610_v4 = vshll.u32 %v522_v51, 16  ;;  %v534_v6 = vshll.u32 %v511_v54, 16 }
  0x1c   : > { %v585_v55 = vsel %vm2713_vm4, %v580_v45, %v584_v37  ;;  %v646_v56 = vunpack.c.l.b16 %v571_v50  ;;  %v514_v5 = vld [vmem:[%s2696_s26 + $0xc] sm:$0x1]  ;;  %v545_v7 = vshrl.u32 %v513_v60, 16  ;;  %v533_v10 = vrot.slane %v531_v2, 4  ;;  %v2359_v12 = vld [vmem:[%s3359_s1 + $0x10] sm:$0xf] }
  0x1d   : > { %v647_v61 = vunpack.c.l.b16 %v585_v55  ;;  %v548_v11 = vshll.u32 %v513_v60, 16  ;;  %v2308_v13 = vor.u32 %v2557_v62, %v2307_v59  ;;  %v536_v14 = vrot.slane %v534_v6, 5  ;;  %v523_v25 = vld [vmem:[%s2696_s26 + $0x30] sm:$0xf]  ;;  %v525_v27 = vld [vmem:[%s2696_s26 + $0x38] sm:$0xf] }
  0x1e   : > { %v540_v15 = vshll.u32 %v512_v1, 16  ;;  %v547_v16 = vrot.slane %v545_v7, 4  ;;  %v594_v17 = vrot.slane %v593_v63, 4  ;;  %v598_v18 = vrot.slane %v596_v0, 5  ;;  %v2438_v39 = vld [vmem:[%s3359_s1 + $0x1c] sm:$0xf] }
  0x1f   : > { %v653_v8 = vpack.c.b16 %v647_v61, %v646_v56  ;;  %v550_v19 = vrot.slane %v548_v11, 5  ;;  %v554_v20 = vshll.u32 %v514_v5, 16  ;;  %v608_v21 = vrot.slane %v607_v3, 4  ;;  %v2396_v40 = vld [vmem:[%s3359_s1 + $0x14] sm:$0xf] }
  0x20   : > { %v612_v22 = vrot.slane %v610_v4, 5  ;;  %v537_v23 = vor.u32 %v536_v14, %v533_v10  ;;  %v835_v24 = vsel %vm414_vm0, %v2359_v12, 0  ;;  %v542_v29 = vrot.slane %v540_v15, 5  ;;  %v2409_v41 = vld [vmem:[%s3359_s1 + $0x18] sm:$0xf] }
  0x21   : > { %2319 = vmatmul.msk.bf16.vlgmr.msra.gmra.mxu2 %vm401_vm1, %v653_v8  ;;  %v551_v26 = vor.u32 %v550_v19, %v547_v16  ;;  %v556_v30 = vrot.slane %v554_v20, 5  ;;  %v599_v31 = vsel %vm2713_vm4, %v594_v17, %v598_v18  ;;  %v615_v33 = vshrl.u32 %v523_v25, 16  ;;  %v524_v45 = vld [vmem:[%s2696_s26 + $0x34] sm:$0x1]  ;;  %v2380_v46 = vld [vmem:[%s2696_s26 + $0x90] sm:$0xf] }
  0x22   : > { %v538_v28 = vrot.slane %v537_v23, 4  ;;  %v613_v34 = vsel %vm2713_vm4, %v608_v21, %v612_v22  ;;  %v618_v36 = vshll.u32 %v523_v25, 16  ;;  %v629_v37 = vshrl.u32 %v525_v27, 16  ;;  %v526_v48 = vld [vmem:[%s2696_s26 + $0x3c] sm:$0x1] }
  0x23   : > { %2313 = vmatmul.msk.bf16.vlgmr.msrb.gmra.mxu0 %vm401_vm1, %v2300_v9  ;;  %v552_v32 = vrot.slane %v551_v26, 4  ;;  %v632_v38 = vshll.u32 %v525_v27, 16  ;;  %v648_v42 = vunpack.c.l.b16 %v599_v31  ;;  %v649_v47 = vunpack.c.l.b16 %v613_v34  ;;  %v2382_v56 = vld [vmem:[%s2696_s26 + $0x98] sm:$0xf]  ;;  %v2562_v58 = vld [vmem:[%s2696_s26 + $0x7c] sm:$0xf0] }
  0x24   : > { %2295 = vmatmul.msk.bf16.gmra.mxu3 %vm401_vm1, %v2288_v57  ;;  %2315 = vmatmul.msk.bf16.gmra.mxu1 %vm401_vm1, %v2308_v13  ;;  %v543_v43 = vsel %vm2713_vm4, %v538_v28, %v542_v29  ;;  %v617_v49 = vrot.slane %v615_v33, 4  ;;  %v1195_v50 = vsel %vm414_vm0, %v2438_v39, 0  ;;  %v1029_v51 = vsel %vm414_vm0, %v2396_v40, 0  ;;  %v2291_v57 = vld [vmem:[%s2696_s26 + $0x78] sm:$0xf] }
  0x25   : > { %844 = vmatpush.bf16.msrb.mxu0 %v835_v24  ;;  %v557_v44 = vsel %vm2713_vm4, %v552_v32, %v556_v30  ;;  %v620_v52 = vrot.slane %v618_v36, 5  ;;  %v631_v53 = vrot.slane %v629_v37, 4  ;;  %v634_v54 = vrot.slane %v632_v38, 5  ;;  %1204 = vmatpush.bf16.msra.mxu3 %v1195_v50  ;;  %v2311_v63 = vld [vmem:[%s2696_s26 + $0x30] sm:$0xf] }
  0x26   : > { %1038 = vmatpush.bf16.msrb.mxu1 %v1029_v51  ;;  %v1112_v55 = vsel %vm414_vm0, %v2409_v41, 0  ;;  %v644_v59 = vunpack.c.l.b16 %v543_v43  ;;  %v645_v60 = vunpack.c.l.b16 %v557_v44  ;;  %v891_v61 = vshrl.u32 %v2380_v46, 16  ;;  %v2558_v4 = vld [vmem:[%s2696_s26 + $0x34] sm:$0xf0]  ;;  %v2381_v10 = vld [vmem:[%s2696_s26 + $0x94] sm:$0x1] }
  0x27   : > { %1121 = vmatpush.bf16.msrb.mxu2 %v1112_v55  ;;  %v894_v62 = vshll.u32 %v2380_v46, 16  ;;  %v624_v0 = vshll.u32 %v524_v45, 16  ;;  %v905_v1 = vshrl.u32 %v2382_v56, 16  ;;  %v908_v2 = vshll.u32 %v2382_v56, 16  ;;  %v2383_v11 = vld [vmem:[%s2696_s26 + $0x9c] sm:$0x1] }
  0x28   : > { %v654_v3 = vpack.c.b16 %v649_v47, %v648_v42  ;;  %v638_v5 = vshll.u32 %v526_v48, 16  ;;  %v893_v6 = vrot.slane %v891_v61, 4  ;;  %v621_v8 = vor.u32 %v620_v52, %v617_v49  ;;  %v2475_v15 = vld [vmem:[%s3359_s1 + $0x20] sm:$0xf]  ;;  %v2386_v28 = vld [vmem:[%s2696_s26 + $0xa8] sm:$0xf] }
  0x29   : > { %v896_v7 = vrot.slane %v894_v62, 5  ;;  %v635_v9 = vor.u32 %v634_v54, %v631_v53  ;;  %v907_v12 = vrot.slane %v905_v1, 4  ;;  %v910_v13 = vrot.slane %v908_v2, 5  ;;  %v2384_v27 = vld [vmem:[%s2696_s26 + $0xa0] sm:$0xf] }
  0x2a   : > { %v652_v14 = vpack.c.b16 %v645_v60, %v644_v59  ;;  %v2292_v16 = vor.u32 %v2562_v58, %v2291_v57  ;;  %v2312_v17 = vor.u32 %v2558_v4, %v2311_v63  ;;  %v626_v18 = vrot.slane %v624_v0, 5  ;;  %v2362_v44 = vld [vmem:[%s2696_s26 + $0xd8] sm:$0xf]  ;;  %v2567_v45 = vld [vmem:[%s2696_s26 + $0xdc] sm:$0xf0] }
  0x2b   : > { %v897_v19 = vor.u32 %v896_v7, %v893_v6  ;;  %v900_v20 = vshll.u32 %v2381_v10, 16  ;;  %v911_v21 = vor.u32 %v910_v13, %v907_v12  ;;  %v914_v22 = vshll.u32 %v2383_v11, 16  ;;  %v2385_v52 = vld [vmem:[%s2696_s26 + $0xa4] sm:$0x1]  ;;  %v2387_v53 = vld [vmem:[%s2696_s26 + $0xac] sm:$0x1] }
  0x2c   : > { %v622_v23 = vrot.slane %v621_v8, 4  ;;  %v636_v24 = vrot.slane %v635_v9, 4  ;;  %v640_v25 = vrot.slane %v638_v5, 5  ;;  %v1389_v26 = vsel %vm414_vm0, %v2475_v15, 0  ;;  %v2333_v55 = vld [vmem:[%s2696_s26 + $0x90] sm:$0xf] }
  0x2d   : > { %v898_v29 = vrot.slane %v897_v19, 4  ;;  %v902_v30 = vrot.slane %v900_v20, 5  ;;  %v912_v31 = vrot.slane %v911_v21, 4  ;;  %v916_v32 = vrot.slane %v914_v22, 5  ;;  %v2563_v56 = vld [vmem:[%s2696_s26 + $0x94] sm:$0xf0] }
  0x2e   : > { %v627_v33 = vsel %vm2713_vm4, %v622_v23, %v626_v18  ;;  %v641_v34 = vsel %vm2713_vm4, %v636_v24, %v640_v25  ;;  %v919_v36 = vshrl.u32 %v2384_v27, 16  ;;  %v922_v37 = vshll.u32 %v2384_v27, 16  ;;  %v2388_v4 = vld [vmem:[%s2696_s26 + $0xb0] sm:$0xf]  ;;  %v2390_v5 = vld [vmem:[%s2696_s26 + $0xb8] sm:$0xf] }
  0x2f   : > { %v933_v38 = vshrl.u32 %v2386_v28, 16  ;;  %v936_v39 = vshll.u32 %v2386_v28, 16  ;;  %v650_v40 = vunpack.c.l.b16 %v627_v33  ;;  %v651_v41 = vunpack.c.l.b16 %v641_v34  ;;  %v2412_v12 = vld [vmem:[%s2696_s26 + $0x8] sm:$0xf]  ;;  %v2571_v13 = vld [vmem:[%s2696_s26 + $0xc] sm:$0xf0] }
  0x30   : > { %v903_v42 = vsel %vm2713_vm4, %v898_v29, %v902_v30  ;;  %v917_v43 = vsel %vm2713_vm4, %v912_v31, %v916_v32  ;;  %v921_v46 = vrot.slane %v919_v36, 4  ;;  %v924_v47 = vrot.slane %v922_v37, 5  ;;  %v2564_v15 = vld [vmem:[%s2696_s26 + $0xa4] sm:$0xf0]  ;;  %v2568_v19 = vld [vmem:[%s2696_s26 + $0xec] sm:$0xf0] }
  0x31   : > { %2320 = vmatmul.msk.bf16.gmra.mxu2 %vm401_vm1, %v654_v3  ;;  %v935_v48 = vrot.slane %v933_v38, 4  ;;  %v938_v49 = vrot.slane %v936_v39, 5  ;;  %v1004_v50 = vunpack.c.l.b16 %v903_v42  ;;  %v1005_v51 = vunpack.c.l.b16 %v917_v43  ;;  %v2389_v25 = vld [vmem:[%s2696_s26 + $0xb4] sm:$0x1]  ;;  %v2392_v39 = vld [vmem:[%s2696_s26 + $0xc0] sm:$0xf] }
  0x32   : > { %v655_v54 = vpack.c.b16 %v651_v41, %v650_v40  ;;  %v2363_v57 = vor.u32 %v2567_v45, %v2362_v44  ;;  %v925_v58 = vor.u32 %v924_v47, %v921_v46  ;;  %v928_v59 = vshll.u32 %v2385_v52, 16  ;;  %v2394_v40 = vld [vmem:[%s2696_s26 + $0xc8] sm:$0xf]  ;;  %v2416_v41 = vld [vmem:[%s2696_s26 + $0x18] sm:$0xf] }
  0x33   : > { %2318 = vmatmul.msk.bf16.vlgmr.msra.gmra.mxu0 %vm401_vm1, %v652_v14  ;;  %v939_v60 = vor.u32 %v938_v49, %v935_v48  ;;  %v942_v61 = vshll.u32 %v2387_v53, 16  ;;  %v2334_v62 = vor.u32 %v2563_v56, %v2333_v55  ;;  %v1012_v63 = vpack.c.b16 %v1005_v51, %v1004_v50  ;;  %v2337_v14 = vld [vmem:[%s2696_s26 + $0xa0] sm:$0xf]  ;;  %v2341_v50 = vld [vmem:[%s2696_s26 + $0xb0] sm:$0xf] }
  0x34   : > { %2296 = vmatmul.msk.bf16.gmra.mxu3 %vm401_vm1, %v2292_v16  ;;  %2316 = vmatmul.msk.bf16.gmra.mxu1 %vm401_vm1, %v2312_v17  ;;  %v926_v0 = vrot.slane %v925_v58, 4  ;;  %v930_v1 = vrot.slane %v928_v59, 5  ;;  %v947_v8 = vshrl.u32 %v2388_v4, 16  ;;  %v950_v9 = vshll.u32 %v2388_v4, 16  ;;  %v2366_v16 = vld [vmem:[%s2696_s26 + $0xe8] sm:$0xf] }
  0x35   : > { %1398 = vmatpush.bf16.msra.mxu0 %v1389_v26  ;;  %v940_v2 = vrot.slane %v939_v60, 4  ;;  %v944_v3 = vrot.slane %v942_v61, 5  ;;  %v961_v10 = vshrl.u32 %v2390_v5, 16  ;;  %v964_v11 = vshll.u32 %v2390_v5, 16  ;;  %v2391_v26 = vld [vmem:[%s2696_s26 + $0xbc] sm:$0x1] }
  0x36   : > { %v931_v6 = vsel %vm2713_vm4, %v926_v0, %v930_v1  ;;  %v949_v20 = vrot.slane %v947_v8, 4  ;;  %v952_v21 = vrot.slane %v950_v9, 5  ;;  %v2413_v24 = vor.u32 %v2571_v13, %v2412_v12  ;;  %v2572_v44 = vld [vmem:[%s2696_s26 + $0x1c] sm:$0xf0]  ;;  %v2370_v51 = vld [vmem:[%s2696_s26 + $0xf8] sm:$0xf] }
  0x37   : > { %v945_v7 = vsel %vm2713_vm4, %v940_v2, %v944_v3  ;;  %v1006_v17 = vunpack.c.l.b16 %v931_v6  ;;  %v963_v22 = vrot.slane %v961_v10, 4  ;;  %v966_v23 = vrot.slane %v964_v11, 5  ;;  %v2569_v52 = vld [vmem:[%s2696_s26 + $0xfc] sm:$0xf0]  ;;  %v2565_v55 = vld [vmem:[%s2696_s26 + $0xb4] sm:$0xf0] }
  0x38   : > { %v1007_v18 = vunpack.c.l.b16 %v945_v7  ;;  %v2338_v27 = vor.u32 %v2564_v15, %v2337_v14  ;;  %v2367_v28 = vor.u32 %v2568_v19, %v2366_v16  ;;  %v953_v30 = vor.u32 %v952_v21, %v949_v20  ;;  %v2393_v60 = vld [vmem:[%s2696_s26 + $0xc4] sm:$0x1]  ;;  %v2395_v61 = vld [vmem:[%s2696_s26 + $0xcc] sm:$0x1]  ;;  %v2459_v5 = vld [vmem:[%s2696_s26 + $0x8] sm:$0xf] }
  0x39   : > { %v956_v31 = vshll.u32 %v2389_v25, 16  ;;  %v967_v32 = vor.u32 %v966_v23, %v963_v22  ;;  %v970_v33 = vshll.u32 %v2391_v26, 16  ;;  %v975_v45 = vshrl.u32 %v2392_v39, 16  ;;  %v2461_v10 = vld [vmem:[%s2696_s26 + $0x10] sm:$0xf] }
  0x3a   : > { %v1013_v29 = vpack.c.b16 %v1007_v18, %v1006_v17  ;;  %v954_v34 = vrot.slane %v953_v30, 4  ;;  %v978_v46 = vshll.u32 %v2392_v39, 16  ;;  %v989_v47 = vshrl.u32 %v2394_v40, 16  ;;  %v2420_v17 = vld [vmem:[%s2696_s26 + $0x28] sm:$0xf] }
  0x3b   : > { %v958_v36 = vrot.slane %v956_v31, 5  ;;  %v968_v37 = vrot.slane %v967_v32, 4  ;;  %v972_v38 = vrot.slane %v970_v33, 5  ;;  %v992_v48 = vshll.u32 %v2394_v40, 16  ;;  %v2573_v18 = vld [vmem:[%s2696_s26 + $0x2c] sm:$0xf0] }
  0x3c   : > { %v2417_v49 = vor.u32 %v2572_v44, %v2416_v41  ;;  %v977_v56 = vrot.slane %v975_v45, 4  ;;  %v991_v58 = vrot.slane %v989_v47, 4  ;;  %v984_v2 = vshll.u32 %v2393_v60, 16  ;;  %v2345_v19 = vld [vmem:[%s2696_s26 + $0xc0] sm:$0xf] }
  0x3d   : > { %v959_v42 = vsel %vm2713_vm4, %v954_v34, %v958_v36  ;;  %v973_v43 = vsel %vm2713_vm4, %v968_v37, %v972_v38  ;;  %v994_v59 = vrot.slane %v992_v48, 5  ;;  %v998_v4 = vshll.u32 %v2395_v61, 16  ;;  %v2566_v20 = vld [vmem:[%s2696_s26 + $0xc4] sm:$0xf0]  ;;  %v2460_v30 = vld [vmem:[%s2696_s26 + $0xc] sm:$0x1] }
  0x3e   : > { %v1008_v53 = vunpack.c.l.b16 %v959_v42  ;;  %v986_v7 = vrot.slane %v984_v2, 5  ;;  %v1251_v11 = vshrl.u32 %v2459_v5, 16  ;;  %v1254_v12 = vshll.u32 %v2459_v5, 16  ;;  %v2374_v23 = vld [vmem:[%s2696_s26 + $0x108] sm:$0xf] }
  0x3f   : > { %v995_v3 = vor.u32 %v994_v59, %v991_v58  ;;  %v1000_v9 = vrot.slane %v998_v4, 5  ;;  %v1265_v13 = vshrl.u32 %v2461_v10, 16  ;;  %v1268_v14 = vshll.u32 %v2461_v10, 16  ;;  %v2462_v31 = vld [vmem:[%s2696_s26 + $0x14] sm:$0x1] }
  0x40   : > { %v1253_v21 = vrot.slane %v1251_v11, 4  ;;  %v1256_v22 = vrot.slane %v1254_v12, 5  ;;  %v2346_v32 = vor.u32 %v2566_v20, %v2345_v19  ;;  %v1260_v37 = vshll.u32 %v2460_v30, 16  ;;  %v2463_v40 = vld [vmem:[%s2696_s26 + $0x18] sm:$0xf] }
  0x41   : > { %2321 = vmatmul.msk.bf16.gmra.mxu2 %vm401_vm1, %v655_v54  ;;  %v1009_v54 = vunpack.c.l.b16 %v973_v43  ;;  %v996_v8 = vrot.slane %v995_v3, 4  ;;  %v1274_v39 = vshll.u32 %v2462_v31, 16  ;;  %v2465_v41 = vld [vmem:[%s2696_s26 + $0x20] sm:$0xf]  ;;  %v1282_v47 = vshll.u32 %v2463_v40, 16 }
  0x42   : > { %v1257_v34 = vor.u32 %v1256_v22, %v1253_v21  ;;  %v1262_v43 = vrot.slane %v1260_v37, 5  ;;  %v1293_v48 = vshrl.u32 %v2465_v41, 16  ;;  %v2464_v60 = vld [vmem:[%s2696_s26 + $0x1c] sm:$0x1]  ;;  %v2466_v61 = vld [vmem:[%s2696_s26 + $0x24] sm:$0x1] }
  0x43   : > { %2376 = vmatmul.msk.bf16.vlgmr.msrb.gmra.mxu0 %vm401_vm1, %v2363_v57  ;;  %v980_v57 = vrot.slane %v978_v46, 5  ;;  %v1014_v0 = vpack.c.b16 %v1009_v54, %v1008_v53  ;;  %v1001_v16 = vsel %vm2713_vm4, %v996_v8, %v1000_v9  ;;  %v1276_v45 = vrot.slane %v1274_v39, 5  ;;  %v2574_v53 = vld [vmem:[%s2696_s26 + $0x3c] sm:$0xf0]  ;;  %v2467_v11 = vld [vmem:[%s2696_s26 + $0x28] sm:$0xf] }
  0x44   : > { %2347 = vmatmul.msk.bf16.vlgmr.msrb.gmra.mxu3 %vm401_vm1, %v2334_v62  ;;  %2397 = vmatmul.msk.bf16.vlgmr.msrb.gmra.mxu1 %vm401_vm1, %v1012_v63  ;;  %v2371_v62 = vor.u32 %v2569_v52, %v2370_v51  ;;  %v2342_v63 = vor.u32 %v2565_v55, %v2341_v50  ;;  %v1011_v26 = vunpack.c.l.b16 %v1001_v16  ;;  %v1258_v42 = vrot.slane %v1257_v34, 4  ;;  %v2424_v52 = vld [vmem:[%s2696_s26 + $0x38] sm:$0xf]  ;;  %v2469_v12 = vld [vmem:[%s2696_s26 + $0x30] sm:$0xf] }
  0x45   : > { %v981_v1 = vor.u32 %v980_v57, %v977_v56  ;;  %v1279_v46 = vshrl.u32 %v2463_v40, 16  ;;  %v1284_v55 = vrot.slane %v1282_v47, 5  ;;  %v1295_v56 = vrot.slane %v1293_v48, 4 }
  0x46   : > { %v1263_v50 = vsel %vm2713_vm4, %v1258_v42, %v1262_v43  ;;  %v1288_v2 = vshll.u32 %v2464_v60, 16  ;;  %v1302_v4 = vshll.u32 %v2466_v61, 16  ;;  %v1310_v16 = vshll.u32 %v2467_v11, 16  ;;  %v2473_v42 = vld [vmem:[%s2696_s26 + $0x40] sm:$0xf] }
  0x47   : > { %v982_v6 = vrot.slane %v981_v1, 4  ;;  %v1281_v54 = vrot.slane %v1279_v46, 4  ;;  %v1364_v58 = vunpack.c.l.b16 %v1263_v50  ;;  %v1352_v50 = vshll.u32 %v2473_v42, 16  ;;  %v2474_v60 = vld [vmem:[%s2696_s26 + $0x44] sm:$0x1] }
  0x48   : > { %v1290_v8 = vrot.slane %v1288_v2, 5  ;;  %v1304_v10 = vrot.slane %v1302_v4, 5  ;;  %v1312_v22 = vrot.slane %v1310_v16, 5  ;;  %v1358_v4 = vshll.u32 %v2474_v60, 16  ;;  %v2453_v16 = vld [vmem:[%s2696_s26 + $0x80] sm:$0xf] }
  0x49   : > { %v987_v15 = vsel %vm2713_vm4, %v982_v6, %v986_v7  ;;  %v1285_v1 = vor.u32 %v1284_v55, %v1281_v54  ;;  %v2577_v54 = vld [vmem:[%s2696_s26 + $0x74] sm:$0xf0] }
  0x4a   : > { %v1010_v25 = vunpack.c.l.b16 %v987_v15  ;;  %v1307_v15 = vshrl.u32 %v2467_v11, 16 }
  0x4b   : > { %v1286_v7 = vrot.slane %v1285_v1, 4 }
  0x4c   : > { %v1015_v36 = vpack.c.b16 %v1011_v26, %v1010_v25  ;;  %v1309_v21 = vrot.slane %v1307_v15, 4  ;;  %v2468_v25 = vld [vmem:[%s2696_s26 + $0x2c] sm:$0x1]  ;;  %v2470_v26 = vld [vmem:[%s2696_s26 + $0x34] sm:$0x1] }
  0x4d   : > { %v1316_v31 = vshll.u32 %v2468_v25, 16 }
  0x4e   : > { %v1313_v30 = vor.u32 %v1312_v22, %v1309_v21 }
  0x50   : > { %v1314_v37 = vrot.slane %v1313_v30, 4  ;;  %v2480_v30 = vld [vmem:[%s3362_s4 + $0x4] sm:$0xf] }
  0x51   : > { %2426 = vmatmul.msk.bf16.vlgmr.msrb.gmra.mxu2 %vm401_vm1, %v2413_v24  ;;  %v2570_v24 = vld [vmem:[%s2696_s26 + $0x10c] sm:$0xf0] }
  0x52   : > { %v2375_v33 = vor.u32 %v2570_v24, %v2374_v23 }
  0x53   : > { %2377 = vmatmul.msk.bf16.gmra.mxu0 %vm401_vm1, %v2367_v28  ;;  %v1270_v28 = vrot.slane %v1268_v14, 5 }
  0x54   : > { %2348 = vmatmul.msk.bf16.gmra.mxu3 %vm401_vm1, %v2338_v27  ;;  %2398 = vmatmul.msk.bf16.gmra.mxu1 %vm401_vm1, %v1013_v29  ;;  %v1267_v27 = vrot.slane %v1265_v13, 4  ;;  %v2421_v29 = vor.u32 %v2573_v18, %v2420_v17  ;;  %v1291_v13 = vsel %vm2713_vm4, %v1286_v7, %v1290_v8  ;;  %v1321_v17 = vshrl.u32 %v2469_v12, 16 }
  0x55   : > { %v1324_v18 = vshll.u32 %v2469_v12, 16  ;;  %v1366_v19 = vunpack.c.l.b16 %v1291_v13 }
  0x56   : > { %v1271_v38 = vor.u32 %v1270_v28, %v1267_v27  ;;  %v1323_v23 = vrot.slane %v1321_v17, 4  ;;  %v2445_v27 = vld [vmem:[%s2696_s26 + $0x60] sm:$0xf]  ;;  %v2576_v28 = vld [vmem:[%s2696_s26 + $0x64] sm:$0xf0] }
  0x57   : > { %v1326_v24 = vrot.slane %v1324_v18, 5  ;;  %v2578_v17 = vld [vmem:[%s2696_s26 + $0x84] sm:$0xf0] }
  0x58   : > { %v1272_v44 = vrot.slane %v1271_v38, 4  ;;  %v1318_v38 = vrot.slane %v1316_v31, 5  ;;  %v2454_v21 = vor.u32 %v2578_v17, %v2453_v16 }
  0x5a   : > { %v1277_v51 = vsel %vm2713_vm4, %v1272_v44, %v1276_v45  ;;  %v1319_v44 = vsel %vm2713_vm4, %v1314_v37, %v1318_v38 }
  0x5b   : > { %v1365_v59 = vunpack.c.l.b16 %v1277_v51  ;;  %v2449_v51 = vld [vmem:[%s2696_s26 + $0x70] sm:$0xf] }
  0x5d   : > { %v1372_v5 = vpack.c.b16 %v1365_v59, %v1364_v58  ;;  %v1354_v58 = vrot.slane %v1352_v50, 5  ;;  %v2472_v59 = vld [vmem:[%s2696_s26 + $0x3c] sm:$0x1] }
  0x5e   : > { %v1344_v2 = vshll.u32 %v2472_v59, 16 }
  0x60   : > { %v1346_v7 = vrot.slane %v1344_v2, 5 }
  0x61   : > { %2427 = vmatmul.msk.bf16.gmra.mxu2 %vm401_vm1, %v2417_v49  ;;  %v1296_v49 = vshll.u32 %v2465_v41, 16  ;;  %v2471_v41 = vld [vmem:[%s2696_s26 + $0x38] sm:$0xf] }
  0x62   : > { %v1335_v47 = vshrl.u32 %v2471_v41, 16  ;;  %v1338_v48 = vshll.u32 %v2471_v41, 16 }
  0x63   : > { %2378 = vmatmul.msk.bf16.gmra.mxu0 %vm401_vm1, %v2371_v62  ;;  %v1298_v57 = vrot.slane %v1296_v49, 5  ;;  %v2425_v62 = vor.u32 %v2574_v53, %v2424_v52  ;;  %v1349_v49 = vshrl.u32 %v2473_v42, 16  ;;  %v1368_v52 = vunpack.c.l.b16 %v1319_v44 }
  0x64   : > { %2349 = vmatmul.msk.bf16.gmra.mxu3 %vm401_vm1, %v2342_v63  ;;  %2399 = vmatmul.msk.bf16.gmra.mxu1 %vm401_vm1, %v1014_v0  ;;  %v2441_v63 = vld [vmem:[%s2696_s26 + $0x50] sm:$0xf]  ;;  %v2575_v0 = vld [vmem:[%s2696_s26 + $0x54] sm:$0xf0]  ;;  %v1337_v55 = vrot.slane %v1335_v47, 4 }
  0x65   : > { %v1299_v3 = vor.u32 %v1298_v57, %v1295_v56  ;;  %v2442_v6 = vor.u32 %v2575_v0, %v2441_v63  ;;  %v1340_v56 = vrot.slane %v1338_v48, 5  ;;  %v1351_v57 = vrot.slane %v1349_v49, 4 }
  0x67   : > { %v1300_v9 = vrot.slane %v1299_v3, 4  ;;  %v1341_v1 = vor.u32 %v1340_v56, %v1337_v55  ;;  %v1355_v3 = vor.u32 %v1354_v58, %v1351_v57  ;;  %v2610_v57 = vmov 0.0  }
  0x68   : > { %1463 = vst.msk [vmem:[#allocation2 + $0x10] sm:$0xff] %vm401_vm1, %v2610_v57 }
  0x69   : > { %v1305_v14 = vsel %vm2713_vm4, %v1300_v9, %v1304_v10  ;;  %v1356_v8 = vrot.slane %v1355_v3, 4  ;;  %v1360_v9 = vrot.slane %v1358_v4, 5  ;;  %1464 = vst.msk [vmem:[#allocation2 + $0x18] sm:$0x3] %vm1461_vm5, %v2610_v57 }
  0x6a   : > { %v1367_v20 = vunpack.c.l.b16 %v1305_v14  ;;  %1460 = vst.msk [vmem:[#allocation2] sm:$0xff] %vm401_vm1, %v2610_v57 }
  0x6b   : > { %v1361_v13 = vsel %vm2713_vm4, %v1356_v8, %v1360_v9  ;;  %1462 = vst.msk [vmem:[#allocation2 + $0x8] sm:$0x3] %vm1461_vm5, %v2610_v57  ;;  %v2494_v8 = vld [vmem:[%s3362_s4 + $0xc] sm:$0xf] }
  0x6c   : > { %v1371_v15 = vunpack.c.l.b16 %v1361_v13  ;;  %1465 = vst.msk [vmem:[#allocation2 + $0x20] sm:$0xff] %vm401_vm1, %v2610_v57 }
  0x6d   : > { %1466 = vst.msk [vmem:[#allocation2 + $0x28] sm:$0x3] %vm1461_vm5, %v2610_v57 }
  0x6e   : > { %1467 = vst.msk [vmem:[#allocation2 + $0x30] sm:$0xff] %vm401_vm1, %v2610_v57 }
  0x6f   : > { %1468 = vst.msk [vmem:[#allocation2 + $0x38] sm:$0x3] %vm1461_vm5, %v2610_v57 }
  0x70   : > { %1469 = vst.msk [vmem:[#allocation2 + $0x40] sm:$0xff] %vm401_vm1, %v2610_v57 }
  0x71   : > { %2428 = vmatmul.msk.bf16.gmra.mxu2 %vm401_vm1, %v2421_v29  ;;  %v1373_v29 = vpack.c.b16 %v1367_v20, %v1366_v19  ;;  %1470 = vst.msk [vmem:[#allocation2 + $0x48] sm:$0x3] %vm1461_vm5, %v2610_v57 }
  0x72   : > { %1471 = vst.msk [vmem:[#allocation2 + $0x50] sm:$0xff] %vm401_vm1, %v2610_v57 }
  0x73   : > { %2379 = vmatmul.msk.bf16.gmra.mxu0 %vm401_vm1, %v2375_v33  ;;  %v1330_v33 = vshll.u32 %v2470_v26, 16  ;;  %v1502_v26 = vld [vmem:[%s3362_s4] sm:$0xf]  ;;  %1472 = vst.msk [vmem:[#allocation2 + $0x58] sm:$0x3] %vm1461_vm5, %v2610_v57 }
  0x74   : > { %2350 = vmatmul.msk.bf16.gmra.mxu3 %vm401_vm1, %v2346_v32  ;;  %2400 = vmatmul.msk.bf16.gmra.mxu1 %vm401_vm1, %v1015_v36  ;;  %v1327_v32 = vor.u32 %v1326_v24, %v1323_v23  ;;  %v2446_v36 = vor.u32 %v2576_v28, %v2445_v27  ;;  %v1574_v27 = vsel %vm414_vm0, %v1502_v26, 0  ;;  %1473 = vst.msk [vmem:[#allocation2 + $0x60] sm:$0xff] %vm401_vm1, %v2610_v57 }
  0x75   : > { %v1332_v40 = vrot.slane %v1330_v33, 5  ;;  %1583 = vmatpush.bf16.msra.mxu2 %v1574_v27  ;;  %1474 = vst.msk [vmem:[#allocation2 + $0x68] sm:$0x3] %vm1461_vm5, %v2610_v57 }
  0x76   : > { %v1328_v39 = vrot.slane %v1327_v32, 4  ;;  %v1530_v32 = vsel %vm414_vm0, %v2480_v30, 0  ;;  %1475 = vst.msk [vmem:[#allocation2 + $0x70] sm:$0xff] %vm401_vm1, %v2610_v57  ;;  %v3025_v30 = vld [vmem:[%s3361_s3] ss:$0 sm:$0xff] }
  0x77   : > { %1539 = vmatpush.bf16.msra.mxu1 %v1530_v32  ;;  %1476 = vst.msk [vmem:[#allocation2 + $0x78] sm:$0x3] %vm1461_vm5, %v2610_v57 }
  0x78   : > { %v1333_v45 = vsel %vm2713_vm4, %v1328_v39, %v1332_v40  ;;  %1477 = vst.msk [vmem:[#allocation2 + $0x80] sm:$0xff] %vm401_vm1, %v2610_v57 }
  0x79   : > { %v1369_v53 = vunpack.c.l.b16 %v1333_v45  ;;  %1478 = vst.msk [vmem:[#allocation2 + $0x88] sm:$0x3] %vm1461_vm5, %v2610_v57 }
  0x7a   : > { %1479 = vst.msk [vmem:[#allocation2 + $0x90] sm:$0xff] %vm401_vm1, %v2610_v57 }
  0x7b   : > { %v1374_v63 = vpack.c.b16 %v1369_v53, %v1368_v52  ;;  %1480 = vst.msk [vmem:[#allocation2 + $0x98] sm:$0x3] %vm1461_vm5, %v2610_v57 }
  0x81   : > { %2429 = vmatmul.msk.bf16.gmra.mxu2 %vm401_vm1, %v2425_v62  ;;  %v2450_v62 = vor.u32 %v2577_v54, %v2449_v51 }
  0x83   : > { %2476 = vmatmul.msk.bf16.vlgmr.msra.gmra.mxu0 %vm401_vm1, %v1372_v5 }
  0x84   : > { %2455 = vmatmul.msk.bf16.vlgmr.msra.gmra.mxu3 %vm401_vm1, %v2442_v6  ;;  %v1342_v6 = vrot.slane %v1341_v1, 4 }
  0x86   : > { %v1347_v12 = vsel %vm2713_vm4, %v1342_v6, %v1346_v7 }
  0x87   : > { %v1370_v14 = vunpack.c.l.b16 %v1347_v12  ;;  %v2504_v12 = vld [vmem:[%s3362_s4 + $0x14] sm:$0xf] }
  0x89   : > { %v1375_v19 = vpack.c.b16 %v1371_v15, %v1370_v14 }
  0x90   : > { %v427_v34 = vpop.f32.mrf.mxu0 }
  0x91   : > { %v2914_v23 = vpop.f32.mrf.mxu1 }
  0x93   : > { %2477 = vmatmul.msk.bf16.gmra.mxu0 %vm401_vm1, %v1373_v29 }
  0x94   : > { %2456 = vmatmul.msk.bf16.gmra.mxu3 %vm401_vm1, %v2446_v36 }
  0x97   : > { %v2884_v43 = vpop.f32.mrf.mxu3 }
  0x98   : > { %v2890_v46 = vpop.f32.mrf.mxu0 }
  0x99   : > { %v2931_v31 = vpop.f32.mrf.mxu1 }
  0x9f   : > { %v2896_v61 = vpop.f32.mrf.mxu3 }
  0xa0   : > { %v491_v0 = vpop.f32.mrf.mxu0 }
  0xa1   : > { %v492_v5 = vadd.f32 %v491_v0, %v427_v34  ;;  %v2938_v37 = vpop.f32.mrf.mxu1 }
  0xa3   : > { %2478 = vmatmul.msk.bf16.gmra.mxu0 %vm401_vm1, %v1374_v63  ;;  %v2489_v63 = vld [vmem:[%s3362_s4 + $0x8] sm:$0xf] }
  0xa4   : > { %2457 = vmatmul.msk.bf16.gmra.mxu3 %vm401_vm1, %v2450_v62  ;;  %v2918_v35 = vpop.f32.mrf.mxu2  ;;  %v1632_v0 = vsel %vm414_vm0, %v2489_v63, 0 }
  0xa5   : > { %1641 = vmatpush.bf16.msrb.mxu3 %v1632_v0 }
  0xa7   : > { %v2900_v10 = vpop.f32.mrf.mxu3 }
  0xa8   : > { %v2902_v11 = vpop.f32.mrf.mxu0 }
  0xa9   : > { %v2944_v41 = vpop.f32.mrf.mxu1 }
  0xac   : > { %v2934_v33 = vpop.f32.mrf.mxu2 }
  0xaf   : > { %v2910_v18 = vpop.f32.mrf.mxu3 }
  0xb0   : > { %v680_v20 = vpop.f32.mrf.mxu0 }
  0xb1   : > { %v700_v22 = vadd.f32 %v680_v20, %v492_v5  ;;  %v2952_v47 = vpop.f32.mrf.mxu1  ;;  %v494_v5 = vadd.f32 %v2902_v11, %v2890_v46  ;;  %v1698_v46 = vsel %vm414_vm0, %v2494_v8, 0  ;;  %v1830_v11 = vsel %vm414_vm0, %v2504_v12, 0  ;;  %v1503_v12 = vld [vmem:[#allocation2 + $0x1] sm:$0xff] }
  0xb2   : > { %1707 = vmatpush.bf16.msrb.mxu0 %v1698_v46  ;;  %1839 = vmatpush.bf16.msrb.mxu2 %v1830_v11  ;;  %v1490_v46 = vld [vmem:[#allocation2] sm:$0xff] }
  0xb3   : > { %2479 = vmatmul.msk.bf16.gmra.mxu0 %vm401_vm1, %v1375_v19  ;;  %v497_v19 = vadd.f32 %v2914_v23, %v2884_v43  ;;  %v2499_v43 = vld [vmem:[%s3362_s4 + $0x10] sm:$0xf]  ;;  %v1605_v11 = vld [vmem:[#allocation2 + $0x2] sm:$0xff] }
  0xb4   : > { %2458 = vmatmul.msk.bf16.gmra.mxu3 %vm401_vm1, %v2454_v21  ;;  %v2940_v38 = vpop.f32.mrf.mxu2  ;;  %v1764_v23 = vsel %vm414_vm0, %v2499_v43, 0 }
  0xb5   : > { %v702_v27 = vadd.f32 %v2918_v35, %v497_v19  ;;  %1773 = vmatpush.bf16.msrb.mxu1 %v1764_v23 }
  0xb7   : > { %v2916_v24 = vpop.f32.mrf.mxu3 }
  0xb8   : > { %v2920_v25 = vpop.f32.mrf.mxu0 }
  0xb9   : > { %v2964_v53 = vpop.f32.mrf.mxu1  ;;  %v701_v9 = vadd.f32 %v2920_v25, %v494_v5  ;;  %v3019_v25 = vld [vmem:[%s3360_s2] ss:$0 sm:$0xff] }
  0xbc   : > { %v2946_v42 = vpop.f32.mrf.mxu2 }
  0xbf   : > { %v2926_v28 = vpop.f32.mrf.mxu3 }
  0xc0   : > { %v846_v29 = vpop.f32.mrf.mxu0 }
  0xc1   : > { %v1040_v58 = vpop.f32.mrf.mxu1 }
  0xc4   : > { %v2956_v49 = vpop.f32.mrf.mxu2 }
  0xc7   : > { %v763_v34 = vpop.f32.mrf.mxu3 }
  0xc8   : > { %v2936_v36 = vpop.f32.mrf.mxu0  ;;  %v783_v1 = vadd.f32 %v763_v34, %v700_v22 }
  0xc9   : > { %v1042_v2 = vpop.f32.mrf.mxu1 }
  0xca   : > { %v866_v6 = vadd.f32 %v846_v29, %v783_v1 }
  0xcc   : > { %v2966_v54 = vpop.f32.mrf.mxu2  ;;  %v1060_v13 = vadd.f32 %v1040_v58, %v866_v6  ;;  %v499_v58 = vadd.f32 %v2931_v31, %v2896_v61  ;;  %v502_v31 = vadd.f32 %v2938_v37, %v2900_v10 }
  0xcf   : > { %v765_v39 = vpop.f32.mrf.mxu3 }
  0xd0   : > { %v2942_v40 = vpop.f32.mrf.mxu0  ;;  %v784_v14 = vadd.f32 %v765_v39, %v701_v9 }
  0xd1   : > { %v1045_v16 = vpop.f32.mrf.mxu1 }
  0xd2   : > { %v867_v20 = vadd.f32 %v2936_v36, %v784_v14 }
  0xd4   : > { %v1123_v59 = vpop.f32.mrf.mxu2  ;;  %v1061_v32 = vadd.f32 %v1042_v2, %v867_v20  ;;  %v703_v2 = vadd.f32 %v2934_v33, %v499_v58 }
  0xd5   : > { %v1143_v15 = vadd.f32 %v1123_v59, %v1060_v13 }
  0xd7   : > { %v2948_v44 = vpop.f32.mrf.mxu3 }
  0xd8   : > { %v2950_v45 = vpop.f32.mrf.mxu0  ;;  %v785_v34 = vadd.f32 %v2948_v44, %v702_v27 }
  0xd9   : > { %v1047_v63 = vpop.f32.mrf.mxu1 }
  0xda   : > { %v868_v59 = vadd.f32 %v2942_v40, %v785_v34 }
  0xdc   : > { %v1125_v3 = vpop.f32.mrf.mxu2 }
  0xdd   : > { %v1144_v39 = vadd.f32 %v1125_v3, %v1061_v32  ;;  %v504_v32 = vadd.f32 %v2944_v41, %v2910_v18 }
  0xdf   : > { %v2954_v48 = vpop.f32.mrf.mxu3 }
  0xe0   : > { %v2958_v50 = vpop.f32.mrf.mxu0  ;;  %v786_v3 = vadd.f32 %v2954_v48, %v703_v2 }
  0xe1   : > { %v1050_v20 = vpop.f32.mrf.mxu1 }
  0xe2   : > { %v869_v33 = vadd.f32 %v2950_v45, %v786_v3 }
  0xe4   : > { %v1128_v21 = vpop.f32.mrf.mxu2  ;;  %v1063_v45 = vadd.f32 %v1047_v63, %v869_v33 }
  0xe7   : > { %v2960_v51 = vpop.f32.mrf.mxu3 }
  0xe8   : > { %v2962_v52 = vpop.f32.mrf.mxu0 }
  0xec   : > { %v1130_v6 = vpop.f32.mrf.mxu2 }
  0xef   : > { %v2968_v55 = vpop.f32.mrf.mxu3 }
  0xf0   : > { %v2970_v56 = vpop.f32.mrf.mxu0 }
  0xf4   : > { %v1133_v27 = vpop.f32.mrf.mxu2 }
  0xf7   : > { %v2978_v60 = vpop.f32.mrf.mxu3 }
  0xf8   : > { %v2981_v62 = vpop.f32.mrf.mxu0 }
  0xfc   : > { %v1135_v41 = vpop.f32.mrf.mxu2 }
  0xff   : > { %v2994_v4 = vpop.f32.mrf.mxu3 }
 0x100   : > { %v1400_v7 = vpop.f32.mrf.mxu0 }
 0x107   : > { %v1206_v17 = vpop.f32.mrf.mxu3 }
 0x108   : > { %v1226_v22 = vadd.f32 %v1206_v17, %v1143_v15  ;;  %v1402_v26 = vpop.f32.mrf.mxu0  ;;  %v704_v15 = vadd.f32 %v2940_v38, %v502_v31 }
 0x10a   : > { %v1420_v29 = vadd.f32 %v1400_v7, %v1226_v22  ;;  %v1062_v7 = vadd.f32 %v1045_v16, %v868_v59 }
 0x10c   : > { %v1432_v36 = vmul.f32 %v3019_v25, %v1420_v29  ;;  %v1145_v9 = vadd.f32 %v1128_v21, %v1062_v7  ;;  %v1146_v29 = vadd.f32 %v1130_v6, %v1063_v45 }
 0x10e   : > { %v1444_v35 = vadd.f32 %v3025_v30, %v1432_v36 }
 0x10f   : > { %v1208_v57 = vpop.f32.mrf.mxu3 }
 0x110   : > { %v1452_v0 = vmax.f32 %v1444_v35, 0.0  ;;  %v1227_v1 = vadd.f32 %v1208_v57, %v1144_v39  ;;  %v1405_v5 = vpop.f32.mrf.mxu0  ;;  %v705_v35 = vadd.f32 %v2946_v42, %v504_v32  ;;  %v507_v42 = vadd.f32 %v2952_v47, %v2916_v24 }
 0x112   : > { %1482 = vst.msk [vmem:[#allocation2 + $0x11] sm:$0xff] %vm401_vm1, %v1452_v0  ;;  %v1421_v44 = vadd.f32 %v1402_v26, %v1227_v1  ;;  %v787_v26 = vadd.f32 %v2960_v51, %v704_v15  ;;  %v788_v0 = vadd.f32 %v2968_v55, %v705_v35  ;;  %v1052_v1 = vpop.f32.mrf.mxu1  ;;  %v509_v15 = vadd.f32 %v2964_v53, %v2926_v28  ;;  %v2509_v28 = vld [vmem:[%s3362_s4 + $0x18] sm:$0xf] }
 0x113   : > { %v1897_v53 = vsel %vm414_vm0, %v2509_v28, 0 }
 0x114   : > { %v1433_v8 = vmul.f32 %v3019_v25, %v1421_v44  ;;  %v870_v34 = vadd.f32 %v2958_v50, %v787_v26  ;;  %v871_v6 = vadd.f32 %v2962_v52, %v788_v0  ;;  %1906 = vmatpush.bf16.msra.mxu3 %v1897_v53  ;;  %v2534_v53 = vld [vmem:[%s2696_s26 + $0xd8] sm:$0xf] }
 0x116   : > { %v1445_v61 = vadd.f32 %v3025_v30, %v1433_v8  ;;  %v1064_v63 = vadd.f32 %v1050_v20, %v870_v34  ;;  %v706_v8 = vadd.f32 %v2956_v49, %v507_v42  ;;  %v2519_v42 = vld [vmem:[%s3362_s4 + $0x20] sm:$0xf] }
 0x117   : > { %v1211_v40 = vpop.f32.mrf.mxu3 }
 0x118   : > { %v1453_v13 = vmax.f32 %v1445_v61, 0.0  ;;  %v1228_v14 = vadd.f32 %v1211_v40, %v1145_v9  ;;  %v1407_v16 = vpop.f32.mrf.mxu0  ;;  %v1147_v18 = vadd.f32 %v1133_v27, %v1064_v63  ;;  %v789_v49 = vadd.f32 %v2978_v60, %v706_v8 }
 0x119   : > { %v3046_v48 = vld [vmem:[#allocation2 + $0x11] sm:$0xff] }
 0x11a   : > { %v1491_v17 = vld [vmem:[#allocation2 + $0x10] sm:$0xff]  ;;  %1483 = vst.msk [vmem:[#allocation2 + $0x21] sm:$0xff] %vm401_vm1, %v1453_v13  ;;  %v1422_v10 = vadd.f32 %v1405_v5, %v1228_v14  ;;  %v1511_v37 = vpack.c.bf16 %v3046_v48, %v1503_v12  ;;  %v1065_v12 = vadd.f32 %v1052_v1, %v871_v6  ;;  %v1055_v13 = vpop.f32.mrf.mxu1 }
 0x11b   : > { %v3048_v19 = vld [vmem:[#allocation2 + $0x12] sm:$0xff]  ;;  %v1498_v21 = vpack.c.bf16 %v1491_v17, %v1490_v46 }
 0x11c   : > { %v1613_v22 = vpack.c.bf16 %v3048_v19, %v1605_v11  ;;  %v1434_v38 = vmul.f32 %v3019_v25, %v1422_v10  ;;  %2481 = vmatmul.msk.bf16.vlgmr.msra.gmra.mxu1 %vm401_vm1, %v1511_v37  ;;  %v1148_v33 = vadd.f32 %v1135_v41, %v1065_v12  ;;  %v707_v37 = vadd.f32 %v2966_v54, %v509_v15  ;;  %v2100_v41 = vld [vmem:[%s3365_s7] sm:$0xf] }
 0x11d   : > { %2485 = vmatmul.msk.bf16.vlgmr.msra.gmra.mxu2 %vm401_vm1, %v1498_v21  ;;  %v2134_v6 = vsel %vm414_vm0, %v2100_v41, 0 }
 0x11e   : > { %2490 = vmatmul.msk.bf16.vlgmr.msrb.gmra.mxu3 %vm401_vm1, %v1613_v22  ;;  %v1446_v43 = vadd.f32 %v3025_v30, %v1434_v38  ;;  %v790_v26 = vadd.f32 %v2994_v4, %v707_v37  ;;  %2143 = vmatpush.bf16.msra.mxu2 %v2134_v6 }
 0x11f   : > { %v1213_v23 = vpop.f32.mrf.mxu3 }
 0x120   : > { %v1454_v36 = vmax.f32 %v1446_v43, 0.0  ;;  %v1229_v51 = vadd.f32 %v1213_v23, %v1146_v29  ;;  %v1410_v59 = vpop.f32.mrf.mxu0  ;;  %v873_v29 = vadd.f32 %v2981_v62, %v790_v26 }
 0x121   : > { %v1672_v39 = vld [vmem:[#allocation2 + $0x20] sm:$0xff] }
 0x122   : > { %1484 = vst.msk [vmem:[#allocation2 + $0x31] sm:$0xff] %vm401_vm1, %v1454_v36  ;;  %v1423_v57 = vadd.f32 %v1407_v16, %v1229_v51  ;;  %v1679_v58 = vpack.c.bf16 %v1672_v39, %v1491_v17  ;;  %v3071_v3 = vld [vmem:[#allocation2 + $0x21] sm:$0xff]  ;;  %v872_v16 = vadd.f32 %v2970_v56, %v789_v49  ;;  %v1138_v17 = vpop.f32.mrf.mxu2  ;;  %v1057_v4 = vpop.f32.mrf.mxu1 }
 0x123   : > { %v3073_v55 = vld [vmem:[#allocation2 + $0x22] sm:$0xff]  ;;  %v1067_v1 = vadd.f32 %v1057_v4, %v873_v29 }
 0x124   : > { %v1435_v5 = vmul.f32 %v3019_v25, %v1423_v57  ;;  %2495 = vmatmul.msk.bf16.vlgmr.msrb.gmra.mxu0 %vm401_vm1, %v1679_v58  ;;  %v1066_v27 = vadd.f32 %v1055_v13, %v872_v16 }
 0x126   : > { %v1447_v50 = vadd.f32 %v3025_v30, %v1435_v5  ;;  %v1149_v56 = vadd.f32 %v1138_v17, %v1066_v27 }
 0x127   : > { %v1216_v2 = vpop.f32.mrf.mxu3 }
 0x128   : > { %v1455_v44 = vmax.f32 %v1447_v50, 0.0  ;;  %v1230_v7 = vadd.f32 %v1216_v2, %v1147_v18  ;;  %v1412_v11 = vpop.f32.mrf.mxu0  ;;  %v2514_v50 = vld [vmem:[%s3362_s4 + $0x1c] sm:$0xf] }
 0x129   : > { %v3076_v9 = vld [vmem:[#allocation2 + $0x31] sm:$0xff] }
 0x12a   : > { %v1493_v61 = vld [vmem:[#allocation2 + $0x30] sm:$0xff]  ;;  %1485 = vst.msk [vmem:[#allocation2 + $0x41] sm:$0xff] %vm401_vm1, %v1455_v44  ;;  %v1424_v40 = vadd.f32 %v1410_v59, %v1230_v7  ;;  %v3083_v24 = vpack.c.bf16 %v3076_v9, %v3071_v3  ;;  %v1140_v58 = vpop.f32.mrf.mxu2  ;;  %v1963_v44 = vsel %vm414_vm0, %v2514_v50, 0  ;;  %v2029_v7 = vsel %vm414_vm0, %v2519_v42, 0 }
 0x12b   : > { %v3078_v31 = vld [vmem:[#allocation2 + $0x32] sm:$0xff]  ;;  %v3085_v47 = vpack.c.bf16 %v1493_v61, %v1672_v39  ;;  %v1150_v18 = vadd.f32 %v1140_v58, %v1067_v1  ;;  %1972 = vmatpush.bf16.msra.mxu0 %v1963_v44  ;;  %2038 = vmatpush.bf16.msra.mxu1 %v2029_v7  ;;  %v2546_v7 = vld [vmem:[%s2696_s26 + $0x108] sm:$0xf] }
 0x12c   : > { %v3089_v52 = vpack.c.bf16 %v3078_v31, %v3073_v55  ;;  %v1436_v46 = vmul.f32 %v3019_v25, %v1424_v40  ;;  %2482 = vmatmul.msk.bf16.gmra.mxu1 %vm401_vm1, %v3083_v24 }
 0x12d   : > { %2486 = vmatmul.msk.bf16.gmra.mxu2 %vm401_vm1, %v3085_v47 }
 0x12e   : > { %2491 = vmatmul.msk.bf16.gmra.mxu3 %vm401_vm1, %v3089_v52  ;;  %v1448_v14 = vadd.f32 %v3025_v30, %v1436_v46 }
 0x12f   : > { %v1218_v60 = vpop.f32.mrf.mxu3 }
 0x130   : > { %v1456_v20 = vmax.f32 %v1448_v14, 0.0  ;;  %v1231_v10 = vadd.f32 %v1218_v60, %v1148_v33  ;;  %v1415_v43 = vpop.f32.mrf.mxu0 }
 0x131   : > { %v1674_v21 = vld [vmem:[#allocation2 + $0x40] sm:$0xff] }
 0x132   : > { %1486 = vst.msk [vmem:[#allocation2 + $0x51] sm:$0xff] %vm401_vm1, %v1456_v20  ;;  %v1425_v22 = vadd.f32 %v1412_v11, %v1231_v10  ;;  %v1680_v45 = vpack.c.bf16 %v1674_v21, %v1493_v61  ;;  %v3114_v36 = vld [vmem:[#allocation2 + $0x41] sm:$0xff] }
 0x133   : > { %v3116_v51 = vld [vmem:[#allocation2 + $0x42] sm:$0xff]  ;;  %v1746_v26 = vpack.c.bf16 %v3114_v36, %v3076_v9  ;;  %v1877_v9 = vld [vmem:[#allocation2 + $0x90] sm:$0xff] }
 0x134   : > { %v1437_v38 = vmul.f32 %v3019_v25, %v1425_v22  ;;  %2496 = vmatmul.msk.bf16.gmra.mxu0 %vm401_vm1, %v1680_v45  ;;  %v1745_v22 = vpack.c.bf16 %v3071_v3, %v3046_v48  ;;  %v1811_v45 = vpack.c.bf16 %v3073_v55, %v3048_v19  ;;  %v1812_v27 = vpack.c.bf16 %v3116_v51, %v3078_v31 }
 0x136   : > { %v1449_v54 = vadd.f32 %v3025_v30, %v1437_v38  ;;  %v1943_v38 = vld [vmem:[#allocation2 + $0x91] sm:$0xff] }
 0x137   : > { %v1221_v23 = vpop.f32.mrf.mxu3 }
 0x138   : > { %v1457_v32 = vmax.f32 %v1449_v54, 0.0  ;;  %v1232_v34 = vadd.f32 %v1221_v23, %v1149_v56  ;;  %v1417_v12 = vpop.f32.mrf.mxu0  ;;  %v2579_v56 = vld [vmem:[%s2696_s26 + $0xdc] sm:$0xf0] }
 0x139   : > { %v3118_v39 = vld [vmem:[#allocation2 + $0x51] sm:$0xff]  ;;  %v2535_v54 = vor.u32 %v2579_v56, %v2534_v53 }
 0x13a   : > { %v1495_v35 = vld [vmem:[#allocation2 + $0x50] sm:$0xff]  ;;  %1487 = vst.msk [vmem:[#allocation2 + $0x61] sm:$0xff] %vm401_vm1, %v1457_v32  ;;  %v1426_v59 = vadd.f32 %v1415_v43, %v1232_v34  ;;  %v1513_v62 = vpack.c.bf16 %v3118_v39, %v3114_v36  ;;  %v2538_v32 = vld [vmem:[%s2696_s26 + $0xe8] sm:$0xf] }
 0x13b   : > { %v3120_v57 = vld [vmem:[#allocation2 + $0x52] sm:$0xff]  ;;  %v1500_v63 = vpack.c.bf16 %v1495_v35, %v1674_v21 }
 0x13c   : > { %v3127_v0 = vpack.c.bf16 %v3120_v57, %v3116_v51  ;;  %v1438_v5 = vmul.f32 %v3019_v25, %v1426_v59  ;;  %2483 = vmatmul.msk.bf16.gmra.mxu1 %vm401_vm1, %v1513_v62  ;;  %v2580_v34 = vld [vmem:[%s2696_s26 + $0xec] sm:$0xf0] }
 0x13d   : > { %2487 = vmatmul.msk.bf16.gmra.mxu2 %vm401_vm1, %v1500_v63 }
 0x13e   : > { %2492 = vmatmul.msk.bf16.gmra.mxu3 %vm401_vm1, %v3127_v0  ;;  %v1450_v2 = vadd.f32 %v3025_v30, %v1438_v5 }
 0x13f   : > { %v1223_v8 = vpop.f32.mrf.mxu3 }
 0x140   : > { %v1458_v61 = vmax.f32 %v1450_v2, 0.0  ;;  %v1233_v40 = vadd.f32 %v1223_v8, %v1150_v18  ;;  %v2582_v8 = vld [vmem:[%s2696_s26 + $0x10c] sm:$0xf0] }
 0x141   : > { %v1676_v49 = vld [vmem:[#allocation2 + $0x60] sm:$0xff] }
 0x142   : > { %1488 = vst.msk [vmem:[#allocation2 + $0x71] sm:$0xff] %vm401_vm1, %v1458_v61  ;;  %v1427_v46 = vadd.f32 %v1417_v12, %v1233_v40  ;;  %v1681_v11 = vpack.c.bf16 %v1676_v49, %v1495_v35  ;;  %v1509_v15 = vld [vmem:[#allocation2 + $0x61] sm:$0xff]  ;;  %v2009_v40 = vld [vmem:[#allocation2 + $0x92] sm:$0xff] }
 0x143   : > { %v1611_v60 = vld [vmem:[#allocation2 + $0x62] sm:$0xff]  ;;  %v1747_v48 = vpack.c.bf16 %v1509_v15, %v3118_v39  ;;  %v2539_v39 = vor.u32 %v2580_v34, %v2538_v32 }
 0x144   : > { %v1439_v33 = vmul.f32 %v3019_v25, %v1427_v46  ;;  %2497 = vmatmul.msk.bf16.gmra.mxu0 %vm401_vm1, %v1681_v11  ;;  %v1813_v19 = vpack.c.bf16 %v1611_v60, %v3120_v57 }
 0x146   : > { %v1451_v13 = vadd.f32 %v3025_v30, %v1439_v33 }
 0x148   : > { %v1459_v14 = vmax.f32 %v1451_v13, 0.0 }
 0x149   : > { %v1510_v16 = vld [vmem:[#allocation2 + $0x71] sm:$0xff] }
 0x14a   : > { %v1497_v17 = vld [vmem:[#allocation2 + $0x70] sm:$0xff]  ;;  %1489 = vst.msk [vmem:[#allocation2 + $0x81] sm:$0xff] %vm401_vm1, %v1459_v14  ;;  %v1514_v10 = vpack.c.bf16 %v1510_v16, %v1509_v15 }
 0x14b   : > { %v1612_v20 = vld [vmem:[#allocation2 + $0x72] sm:$0xff]  ;;  %v1501_v37 = vpack.c.bf16 %v1497_v17, %v1676_v49  ;;  %v2547_v49 = vor.u32 %v2582_v8, %v2546_v7 }
 0x14c   : > { %v3152_v21 = vpack.c.bf16 %v1612_v20, %v1611_v60  ;;  %2484 = vmatmul.msk.bf16.gmra.mxu1 %vm401_vm1, %v1514_v10 }
 0x14d   : > { %2488 = vmatmul.msk.bf16.gmra.mxu2 %vm401_vm1, %v1501_v37 }
 0x14e   : > { %2493 = vmatmul.msk.bf16.gmra.mxu3 %vm401_vm1, %v3152_v21 }
 0x151   : > { %v1678_v25 = vld [vmem:[#allocation2 + $0x80] sm:$0xff] }
 0x152   : > { %v1682_v30 = vpack.c.bf16 %v1678_v25, %v1497_v17  ;;  %v1744_v3 = vld [vmem:[#allocation2 + $0x81] sm:$0xff] }
 0x153   : > { %v1810_v55 = vld [vmem:[#allocation2 + $0x82] sm:$0xff]  ;;  %v1748_v31 = vpack.c.bf16 %v1744_v3, %v1510_v16  ;;  %v1947_v28 = vpack.c.bf16 %v1943_v38, %v1744_v3 }
 0x154   : > { %2498 = vmatmul.msk.bf16.gmra.mxu0 %vm401_vm1, %v1682_v30  ;;  %v2013_v33 = vpack.c.bf16 %v2009_v40, %v1810_v55 }
 0x15c   : > { %2500 = vmatmul.msk.bf16.vlgmr.msrb.gmra.mxu1 %vm401_vm1, %v1745_v22 }
 0x15d   : > { %2505 = vmatmul.msk.bf16.vlgmr.msrb.gmra.mxu2 %vm401_vm1, %v1811_v45 }
 0x15e   : > { %2510 = vmatmul.msk.bf16.vlgmr.msra.gmra.mxu3 %vm401_vm1, %v3085_v47  ;;  %v1881_v47 = vpack.c.bf16 %v1877_v9, %v1678_v25 }
 0x164   : > { %2515 = vmatmul.msk.bf16.vlgmr.msra.gmra.mxu0 %vm401_vm1, %v3083_v24  ;;  %v1814_v24 = vpack.c.bf16 %v1810_v55, %v1612_v20 }
 0x16c   : > { %2501 = vmatmul.msk.bf16.gmra.mxu1 %vm401_vm1, %v1746_v26 }
 0x16d   : > { %2506 = vmatmul.msk.bf16.gmra.mxu2 %vm401_vm1, %v1812_v27 }
 0x16e   : > { %2511 = vmatmul.msk.bf16.gmra.mxu3 %vm401_vm1, %v1500_v63  ;;  %v2581_v63 = vld [vmem:[%s2696_s26 + $0xfc] sm:$0xf0] }
 0x174   : > { %2516 = vmatmul.msk.bf16.gmra.mxu0 %vm401_vm1, %v1513_v62  ;;  %v2542_v62 = vld [vmem:[%s2696_s26 + $0xf8] sm:$0xf] }
 0x175   : > { %v2543_v18 = vor.u32 %v2581_v63, %v2542_v62 }
 0x17c   : > { %2502 = vmatmul.msk.bf16.gmra.mxu1 %vm401_vm1, %v1747_v48 }
 0x17d   : > { %2507 = vmatmul.msk.bf16.gmra.mxu2 %vm401_vm1, %v1813_v19 }
 0x17e   : > { %2512 = vmatmul.msk.bf16.gmra.mxu3 %vm401_vm1, %v1501_v37 }
 0x184   : > { %2517 = vmatmul.msk.bf16.gmra.mxu0 %vm401_vm1, %v1514_v10 }
 0x18c   : > { %2503 = vmatmul.msk.bf16.gmra.mxu1 %vm401_vm1, %v1748_v31 }
 0x18d   : > { %2508 = vmatmul.msk.bf16.gmra.mxu2 %vm401_vm1, %v1814_v24 }
 0x18e   : > { %2513 = vmatmul.msk.bf16.gmra.mxu3 %vm401_vm1, %v1881_v47 }
 0x194   : > { %2518 = vmatmul.msk.bf16.gmra.mxu0 %vm401_vm1, %v1947_v28 }
 0x199   : > { %v1541_v29 = vpop.f32.mrf.mxu1 }
 0x19c   : > { %2520 = vmatmul.msk.bf16.vlgmr.msra.gmra.mxu1 %vm401_vm1, %v3089_v52 }
 0x19d   : > { %2548 = vmatmul.msk.bf16.vlgmr.msra.gmra.mxu2 %vm401_vm1, %v2535_v54 }
 0x1a0   : > { %v1585_v43 = vpop.f32.mrf.mxu2 }
 0x1a1   : > { %v3192_v23 = vadd.f32 %v1585_v43, %v1541_v29  ;;  %v1543_v4 = vpop.f32.mrf.mxu1  ;;  %v1643_v59 = vpop.f32.mrf.mxu3 }
 0x1a2   : > { %v1709_v41 = vpop.f32.mrf.mxu0 }
 0x1a3   : > { %v1663_v29 = vadd.f32 %v1643_v59, %v3192_v23 }
 0x1a5   : > { %v1729_v32 = vadd.f32 %v1709_v41, %v1663_v29 }
 0x1a8   : > { %v1587_v36 = vpop.f32.mrf.mxu2 }
 0x1a9   : > { %v3196_v51 = vadd.f32 %v1587_v36, %v1543_v4  ;;  %v1546_v35 = vpop.f32.mrf.mxu1 }
 0x1aa   : > { %v1711_v44 = vpop.f32.mrf.mxu0 }
 0x1ac   : > { %2521 = vmatmul.msk.bf16.gmra.mxu1 %vm401_vm1, %v3127_v0  ;;  %v1645_v0 = vpop.f32.mrf.mxu3 }
 0x1ad   : > { %2549 = vmatmul.msk.bf16.gmra.mxu2 %vm401_vm1, %v2539_v39 }
 0x1b0   : > { %v1590_v52 = vpop.f32.mrf.mxu2 }
 0x1b1   : > { %v3201_v57 = vadd.f32 %v1590_v52, %v1546_v35  ;;  %v1548_v58 = vpop.f32.mrf.mxu1  ;;  %v1664_v35 = vadd.f32 %v1645_v0, %v3196_v51  ;;  %v3262_v51 = vld [vmem:[%s3363_s5] ss:$0 sm:$0xff] }
 0x1b2   : > { %v1714_v13 = vpop.f32.mrf.mxu0 }
 0x1b3   : > { %v1730_v63 = vadd.f32 %v1711_v44, %v1664_v35  ;;  %v3267_v44 = vld [vmem:[%s3366_s8] ss:$0 sm:$0xff] }
 0x1b4   : > { %v1648_v46 = vpop.f32.mrf.mxu3 }
 0x1b5   : > { %v1665_v23 = vadd.f32 %v1648_v46, %v3201_v57  ;;  %v3278_v46 = vld [vmem:[%s3367_s9] ss:$0 sm:$0xff] }
 0x1b7   : > { %v1731_v0 = vadd.f32 %v1714_v13, %v1665_v23 }
 0x1b8   : > { %v1592_v1 = vpop.f32.mrf.mxu2 }
 0x1b9   : > { %v3205_v5 = vadd.f32 %v1592_v1, %v1548_v58  ;;  %v1551_v50 = vpop.f32.mrf.mxu1 }
 0x1ba   : > { %v3220_v17 = vpop.f32.mrf.mxu0 }
 0x1bc   : > { %2522 = vmatmul.msk.bf16.gmra.mxu1 %vm401_vm1, %v3152_v21  ;;  %v1650_v16 = vpop.f32.mrf.mxu3 }
 0x1bd   : > { %2550 = vmatmul.msk.bf16.gmra.mxu2 %vm401_vm1, %v2543_v18 }
 0x1c0   : > { %v1595_v42 = vpop.f32.mrf.mxu2 }
 0x1c1   : > { %v3210_v2 = vadd.f32 %v1595_v42, %v1551_v50  ;;  %v1553_v6 = vpop.f32.mrf.mxu1 }
 0x1c2   : > { %v3226_v30 = vpop.f32.mrf.mxu0 }
 0x1c4   : > { %v3224_v21 = vpop.f32.mrf.mxu3 }
 0x1c8   : > { %v1597_v61 = vpop.f32.mrf.mxu2 }
 0x1c9   : > { %v3214_v12 = vadd.f32 %v1597_v61, %v1553_v6  ;;  %v1556_v11 = vpop.f32.mrf.mxu1 }
 0x1ca   : > { %v3230_v48 = vpop.f32.mrf.mxu0 }
 0x1cc   : > { %2523 = vmatmul.msk.bf16.gmra.mxu1 %vm401_vm1, %v2013_v33  ;;  %v3228_v45 = vpop.f32.mrf.mxu3  ;;  %v1666_v33 = vadd.f32 %v1650_v16, %v3205_v5 }
 0x1cd   : > { %2551 = vmatmul.msk.bf16.gmra.mxu2 %vm401_vm1, %v2547_v49  ;;  %v3273_v49 = vld [vmem:[%s3364_s6] ss:$0 sm:$0xff] }
 0x1ce   : > { %v1732_v5 = vadd.f32 %v3220_v17, %v1666_v33 }
 0x1d0   : > { %v1600_v14 = vpop.f32.mrf.mxu2 }
 0x1d1   : > { %v3218_v15 = vadd.f32 %v1600_v14, %v1556_v11  ;;  %v1558_v60 = vpop.f32.mrf.mxu1 }
 0x1d2   : > { %v3234_v9 = vpop.f32.mrf.mxu0 }
 0x1d4   : > { %v3232_v3 = vpop.f32.mrf.mxu3 }
 0x1d5   : > { %v1669_v33 = vadd.f32 %v3232_v3, %v3218_v15 }
 0x1d8   : > { %v1602_v20 = vpop.f32.mrf.mxu2 }
 0x1d9   : > { %v3222_v10 = vadd.f32 %v1602_v20, %v1558_v60  ;;  %v1775_v37 = vpop.f32.mrf.mxu1 }
 0x1da   : > { %v3240_v38 = vpop.f32.mrf.mxu0  ;;  %v1795_v34 = vadd.f32 %v1775_v37, %v1729_v32  ;;  %v1667_v32 = vadd.f32 %v3224_v21, %v3210_v2 }
 0x1dc   : > { %v3238_v47 = vpop.f32.mrf.mxu3 }
 0x1e0   : > { %v1841_v25 = vpop.f32.mrf.mxu2 }
 0x1e1   : > { %v1777_v22 = vpop.f32.mrf.mxu1  ;;  %v1861_v52 = vadd.f32 %v1841_v25, %v1795_v34 }
 0x1e2   : > { %v1974_v43 = vpop.f32.mrf.mxu0  ;;  %v1796_v18 = vadd.f32 %v1777_v22, %v1730_v63  ;;  %v1733_v63 = vadd.f32 %v3226_v30, %v1667_v32 }
 0x1e4   : > { %v1908_v56 = vpop.f32.mrf.mxu3 }
 0x1e5   : > { %v1928_v1 = vadd.f32 %v1908_v56, %v1861_v52 }
 0x1e7   : > { %v1994_v59 = vadd.f32 %v1974_v43, %v1928_v1 }
 0x1e8   : > { %v1843_v26 = vpop.f32.mrf.mxu2 }
 0x1e9   : > { %v1780_v27 = vpop.f32.mrf.mxu1  ;;  %v1862_v42 = vadd.f32 %v1843_v26, %v1796_v18 }
 0x1ea   : > { %v1976_v62 = vpop.f32.mrf.mxu0  ;;  %v1797_v57 = vadd.f32 %v1780_v27, %v1731_v0 }
 0x1ec   : > { %v1910_v36 = vpop.f32.mrf.mxu3 }
 0x1ed   : > { %v1929_v8 = vadd.f32 %v1910_v36, %v1862_v42 }
 0x1ef   : > { %v1995_v13 = vadd.f32 %v1976_v62, %v1929_v8 }
 0x1f0   : > { %v1846_v19 = vpop.f32.mrf.mxu2 }
 0x1f1   : > { %v1782_v55 = vpop.f32.mrf.mxu1  ;;  %v1863_v14 = vadd.f32 %v1846_v19, %v1797_v57 }
 0x1f2   : > { %v1979_v61 = vpop.f32.mrf.mxu0  ;;  %v1798_v19 = vadd.f32 %v1782_v55, %v1732_v5 }
 0x1f4   : > { %v1913_v41 = vpop.f32.mrf.mxu3 }
 0x1f5   : > { %v1930_v16 = vadd.f32 %v1913_v41, %v1863_v14 }
 0x1f7   : > { %v1996_v34 = vadd.f32 %v1979_v61, %v1930_v16 }
 0x1f8   : > { %v1848_v31 = vpop.f32.mrf.mxu2 }
 0x1f9   : > { %v3236_v24 = vpop.f32.mrf.mxu1  ;;  %v1864_v36 = vadd.f32 %v1848_v31, %v1798_v19  ;;  %v1668_v31 = vadd.f32 %v3228_v45, %v3214_v12 }
 0x1fa   : > { %v1981_v29 = vpop.f32.mrf.mxu0 }
 0x1fb   : > { %v1734_v61 = vadd.f32 %v3230_v48, %v1668_v31 }
 0x1fc   : > { %v1915_v26 = vpop.f32.mrf.mxu3 }
 0x1fd   : > { %v1931_v1 = vadd.f32 %v1915_v26, %v1864_v36 }
 0x1ff   : > { %v1997_v42 = vadd.f32 %v1981_v29, %v1931_v1 }
 0x200   : > { %v3242_v28 = vpop.f32.mrf.mxu2 }
 0x201   : > { %v3244_v53 = vpop.f32.mrf.mxu1 }
 0x202   : > { %v1984_v30 = vpop.f32.mrf.mxu0 }
 0x204   : > { %v1918_v23 = vpop.f32.mrf.mxu3 }
 0x208   : > { %v3246_v54 = vpop.f32.mrf.mxu2 }
 0x209   : > { %v3249_v4 = vpop.f32.mrf.mxu1 }
 0x20c   : > { %v1920_v45 = vpop.f32.mrf.mxu3 }
 0x210   : > { %v3251_v39 = vpop.f32.mrf.mxu2 }
 0x211   : > { %v3254_v58 = vpop.f32.mrf.mxu1 }
 0x214   : > { %v1923_v29 = vpop.f32.mrf.mxu3 }
 0x218   : > { %v3256_v50 = vpop.f32.mrf.mxu2 }
 0x219   : > { %v2040_v6 = vpop.f32.mrf.mxu1 }
 0x21a   : > { %v2060_v7 = vadd.f32 %v2040_v6, %v1994_v59  ;;  %v1799_v59 = vadd.f32 %v3236_v24, %v1733_v63 }
 0x21c   : > { %v2072_v40 = vmul.f32 %v3262_v51, %v2060_v7  ;;  %v1865_v41 = vadd.f32 %v3242_v28, %v1799_v59 }
 0x21e   : > { %v2084_v37 = vadd.f32 %v3273_v49, %v2072_v40  ;;  %v1932_v57 = vadd.f32 %v1918_v23, %v1865_v41  ;;  %v1925_v23 = vpop.f32.mrf.mxu3 }
 0x220   : > { %v2145_v11 = vpop.f32.mrf.mxu2 }
 0x221   : > { %v2169_v60 = vmul.f32 %v3267_v44, %v2145_v11  ;;  %v2042_v20 = vpop.f32.mrf.mxu1  ;;  %v1800_v11 = vadd.f32 %v3244_v53, %v1734_v61 }
 0x222   : > { %v2061_v22 = vadd.f32 %v2042_v20, %v1995_v13  ;;  %v1998_v13 = vadd.f32 %v1984_v30, %v1932_v57 }
 0x223   : > { %v2181_v25 = vadd.f32 %v3278_v46, %v2169_v60  ;;  %v1866_v14 = vadd.f32 %v3246_v54, %v1800_v11  ;;  %v1670_v54 = vadd.f32 %v3238_v47, %v3222_v10 }
 0x224   : > { %v2073_v56 = vmul.f32 %v3262_v51, %v2061_v22  ;;  %v1735_v22 = vadd.f32 %v3234_v9, %v1669_v33 }
 0x225   : > { %v2189_v27 = vadd.f32 %v2181_v25, %v2084_v37  ;;  %v1986_v25 = vpop.f32.mrf.mxu0  ;;  %v1933_v26 = vadd.f32 %v1920_v45, %v1866_v14 }
 0x226   : > { %v2085_v17 = vadd.f32 %v3273_v49, %v2073_v56  ;;  %v1801_v16 = vadd.f32 %v3249_v4, %v1735_v22 }
 0x227   : > { %2197 = vst.msk [vmem:[%s3288_s19] sm:$0xff] %vm401_vm1, %v2189_v27  ;;  %v1999_v27 = vadd.f32 %v1986_v25, %v1933_v26 }
 0x228   : > { %v2147_v43 = vpop.f32.mrf.mxu2  ;;  %v1867_v19 = vadd.f32 %v3251_v39, %v1801_v16 }
 0x229   : > { %v2170_v35 = vmul.f32 %v3267_v44, %v2147_v43  ;;  %v2045_v52 = vpop.f32.mrf.mxu1 }
 0x22a   : > { %v2062_v55 = vadd.f32 %v2045_v52, %v1996_v34  ;;  %v1736_v34 = vadd.f32 %v3240_v38, %v1670_v54  ;;  %v1934_v36 = vadd.f32 %v1923_v29, %v1867_v19 }
 0x22b   : > { %v2182_v62 = vadd.f32 %v3278_v46, %v2170_v35 }
 0x22c   : > { %v2074_v2 = vmul.f32 %v3262_v51, %v2062_v55  ;;  %v1802_v10 = vadd.f32 %v3254_v58, %v1736_v34 }
 0x22d   : > { %v2190_v18 = vadd.f32 %v2182_v62, %v2085_v17  ;;  %v1989_v52 = vpop.f32.mrf.mxu0 }
 0x22e   : > { %v2086_v0 = vadd.f32 %v3273_v49, %v2074_v2  ;;  %v2000_v17 = vadd.f32 %v1989_v52, %v1934_v36  ;;  %v1868_v62 = vadd.f32 %v3256_v50, %v1802_v10 }
 0x22f   : > { %2198 = vst.msk [vmem:[%s3288_s19 + $0x8] sm:$0xff] %vm401_vm1, %v2190_v18 }
 0x230   : > { %v2150_v21 = vpop.f32.mrf.mxu2  ;;  %v1935_v59 = vadd.f32 %v1925_v23, %v1868_v62 }
 0x231   : > { %v2171_v6 = vmul.f32 %v3267_v44, %v2150_v21  ;;  %v2047_v7 = vpop.f32.mrf.mxu1 }
 0x232   : > { %v2063_v8 = vadd.f32 %v2047_v7, %v1997_v42 }
 0x233   : > { %v2183_v24 = vadd.f32 %v3278_v46, %v2171_v6 }
 0x234   : > { %v2075_v12 = vmul.f32 %v3262_v51, %v2063_v8 }
 0x235   : > { %v2191_v40 = vadd.f32 %v2183_v24, %v2086_v0  ;;  %v1991_v21 = vpop.f32.mrf.mxu0 }
 0x236   : > { %v2087_v20 = vadd.f32 %v3273_v49, %v2075_v12  ;;  %v2001_v50 = vadd.f32 %v1991_v21, %v1935_v59 }
 0x237   : > { %2199 = vst.msk [vmem:[%s3288_s19 + $0x10] sm:$0xff] %vm401_vm1, %v2191_v40 }
 0x238   : > { %v2152_v28 = vpop.f32.mrf.mxu2 }
 0x239   : > { %v2172_v60 = vmul.f32 %v3267_v44, %v2152_v28  ;;  %v2050_v48 = vpop.f32.mrf.mxu1 }
 0x23a   : > { %v2064_v37 = vadd.f32 %v2050_v48, %v1998_v13 }
 0x23b   : > { %v2184_v53 = vadd.f32 %v3278_v46, %v2172_v60 }
 0x23c   : > { %v2076_v15 = vmul.f32 %v3262_v51, %v2064_v37 }
 0x23d   : > { %v2192_v5 = vadd.f32 %v2184_v53, %v2087_v20 }
 0x23e   : > { %v2088_v43 = vadd.f32 %v3273_v49, %v2076_v15 }
 0x23f   : > { %2200 = vst.msk [vmem:[%s3288_s19 + $0x18] sm:$0xff] %vm401_vm1, %v2192_v5 }
 0x240   : > { %v2155_v3 = vpop.f32.mrf.mxu2 }
 0x241   : > { %v2173_v56 = vmul.f32 %v3267_v44, %v2155_v3  ;;  %v2052_v9 = vpop.f32.mrf.mxu1 }
 0x242   : > { %v2065_v32 = vadd.f32 %v2052_v9, %v1999_v27 }
 0x243   : > { %v2185_v4 = vadd.f32 %v3278_v46, %v2173_v56 }
 0x244   : > { %v2077_v47 = vmul.f32 %v3262_v51, %v2065_v32 }
 0x245   : > { %v2193_v35 = vadd.f32 %v2185_v4, %v2088_v43 }
 0x246   : > { %v2089_v1 = vadd.f32 %v3273_v49, %v2077_v47 }
 0x247   : > { %2201 = vst.msk [vmem:[%s3288_s19 + $0x20] sm:$0xff] %vm401_vm1, %v2193_v35 }
 0x248   : > { %v2157_v39 = vpop.f32.mrf.mxu2 }
 0x249   : > { %v2174_v55 = vmul.f32 %v3267_v44, %v2157_v39  ;;  %v2055_v63 = vpop.f32.mrf.mxu1 }
 0x24a   : > { %v2066_v18 = vadd.f32 %v2055_v63, %v2000_v17 }
 0x24b   : > { %v2186_v38 = vadd.f32 %v3278_v46, %v2174_v55 }
 0x24c   : > { %v2078_v2 = vmul.f32 %v3262_v51, %v2066_v18 }
 0x24d   : > { %v2194_v58 = vadd.f32 %v2186_v38, %v2089_v1 }
 0x24e   : > { %v2090_v6 = vadd.f32 %v3273_v49, %v2078_v2 }
 0x24f   : > { %2202 = vst.msk [vmem:[%s3288_s19 + $0x28] sm:$0xff] %vm401_vm1, %v2194_v58 }
 0x250   : > { %v2160_v31 = vpop.f32.mrf.mxu2 }
 0x251   : > { %v2175_v42 = vmul.f32 %v3267_v44, %v2160_v31  ;;  %v2057_v41 = vpop.f32.mrf.mxu1 }
 0x252   : > { %v2067_v7 = vadd.f32 %v2057_v41, %v2001_v50 }
 0x253   : > { %v2187_v30 = vadd.f32 %v3278_v46, %v2175_v42 }
 0x254   : > { %v2079_v24 = vmul.f32 %v3262_v51, %v2067_v7 }
 0x255   : > { %v2195_v0 = vadd.f32 %v2187_v30, %v2090_v6 }
 0x256   : > { %v2091_v57 = vadd.f32 %v3273_v49, %v2079_v24 }
 0x257   : > { %2203 = vst.msk [vmem:[%s3288_s19 + $0x30] sm:$0xff] %vm401_vm1, %v2195_v0 }
 0x258   : > { %v2162_v8 = vpop.f32.mrf.mxu2 }
 0x259   : > { %v2176_v61 = vmul.f32 %v3267_v44, %v2162_v8 }
 0x25b   : > { %v2188_v40 = vadd.f32 %v3278_v46, %v2176_v61 }
 0x25d   : > { %v2196_v11 = vadd.f32 %v2188_v40, %v2091_v57 }
 0x25f   : > { %2204 = vst.msk [vmem:[%s3288_s19 + $0x38] sm:$0xff] %vm401_vm1, %v2196_v11 }
 0x260 PF: > { %s20_s13 = sadd.s32 1, %s2608_s13  }
 0x261   : > { %p17_p4 = scmp.ge.s32.totalorder %s20_s13, 4  }
 0x263   :  { %19 = sbr.rel (!%p17_p4) target bundleno = 1 (0x1), region = 113 }

</bundles_post_ra>
